<compile_context>
chip_gen: v7x
topology: tpu7x:2x2x1
jax: 0.10.0
libtpu: 0.0.40
codegen_flags: <defaults>
</compile_context>

<pallas_src>
import functools

import jax
import jax.numpy as jnp
from jax.experimental import pallas as pl
from jax.experimental.pallas import tpu as pltpu


def _round_up(x, m):
    return ((x + m - 1) // m) * m


def _maglinear_kernel(x_ref, w_ref, side_ref, iwn_ref,
                      cos_out_ref, cosm_out_ref, acc_ref,
                      *, scale, easy_margin):
    k = pl.program_id(2)

    @pl.when(k == 0)
    def _():
        acc_ref[...] = jnp.zeros_like(acc_ref)

    # Raw x @ W partial product on the MXU, f32 accumulation.  Operands may be
    # bf16 (cast in the wrapper) for native MXU rate + half the HBM traffic.
    acc_ref[...] += jnp.dot(x_ref[...], w_ref[...],
                            preferred_element_type=jnp.float32)

    @pl.when(k == pl.num_programs(2) - 1)
    def _():
        # Packed per-row side values: col 0 = 1/||x||, 1 = cos(m), 2 = sin(m),
        # 3 = threshold, 4 = mm (cols 3/4 only used by the hard-margin path).
        inv_xn = side_ref[:, 0:1]
        cos_m = side_ref[:, 1:2]
        sin_m = side_ref[:, 2:3]

        # cos_theta = (x @ W) / (||x_row|| * ||w_col||), clamped to [-1, 1].
        cos = acc_ref[...] * inv_xn * iwn_ref[...]
        cos = jnp.clip(cos, -1.0, 1.0)
        sin = jnp.sqrt(jnp.maximum(1.0 - cos * cos, 0.0))
        ctm = cos * cos_m - sin * sin_m
        if easy_margin:
            ctm = jnp.where(cos > 0.0, ctm, cos)
        else:
            thr = side_ref[:, 3:4]
            mm = side_ref[:, 4:5]
            ctm = jnp.where(cos > thr, ctm, cos - mm)
        cos_out_ref[...] = (scale * cos).astype(cos_out_ref.dtype)
        cosm_out_ref[...] = (scale * ctm).astype(cosm_out_ref.dtype)


def mag_linear(x, weight, m, l_a, u_a, *, scale=64.0, easy_margin=True,
               use_bf16_matmul=True, tm=None, tn=None, tk=None):
    """JAX/Pallas equivalent of MagLinear.forward.

    Returns ([cos_theta, cos_theta_m], x_norm), matching the PyTorch module.
    """
    B, D = x.shape
    Dw, C = weight.shape
    assert D == Dw, (D, Dw)

    # --- tiny per-row / per-column glue (plain JAX) ------------------------
    xf = x.astype(jnp.float32)
    wf = weight.astype(jnp.float32)
    xn_raw = jnp.sqrt(jnp.sum(jnp.square(xf), axis=1, keepdims=True))   # (B,1)
    x_norm = jnp.clip(xn_raw, l_a, u_a)                                 # returned
    ada = m(x_norm).astype(jnp.float32)                                 # adaptive margin
    cos_m, sin_m = jnp.cos(ada), jnp.sin(ada)
    inv_xn = 1.0 / jnp.maximum(xn_raw, 1e-12)                           # F.normalize eps
    w_col_norm = jnp.sqrt(jnp.sum(jnp.square(wf), axis=0, keepdims=True))  # (1,C)
    inv_wn = 1.0 / jnp.maximum(w_col_norm, 1e-12)
    if easy_margin:
        thr = jnp.zeros_like(ada)
        mm = jnp.zeros_like(ada)
    else:
        thr = jnp.cos(jnp.pi - ada)
        mm = jnp.sin(jnp.pi - ada) * ada

    # --- matmul operand dtype ----------------------------------------------
    if use_bf16_matmul:
        x_mm = x.astype(jnp.bfloat16)
        w_mm = weight.astype(jnp.bfloat16)
    else:
        x_mm, w_mm = x, weight
    in_item = jnp.dtype(x_mm.dtype).itemsize
    out_dtype = x.dtype
    out_item = jnp.dtype(out_dtype).itemsize
    sub = {4: 8, 2: 16, 1: 32}[in_item]          # min sublane tile per dtype

    # --- tile selection (VMEM-budgeted, lane-dense) -------------------------
    if tm is None:
        tm = min(512, _round_up(B, sub))
    tm = max(sub, tm - tm % sub)
    if tn is None:
        tn = min(512, _round_up(C, 128))
    tn = max(128, tn - tn % 128)
    if tk is None:
        # Prefer tk == D (single reduction step) as long as the double-buffered
        # x/w tiles + outputs + accumulator stay under ~40 MiB.
        budget = 40 * 1024 * 1024
        fixed = (2 * (2 * tm * tn * out_item + tm * 128 * 4 + tn * 4)
                 + tm * tn * 4)
        per_k = 2 * (tm + tn) * in_item
        tk_cap = max(128, (budget - fixed) // per_k)
        tk = min(_round_up(D, 128), int(tk_cap))
    tk = max(128, tk - tk % 128)

    Bp, Cp, Dp = _round_up(B, tm), _round_up(C, tn), _round_up(D, tk)

    # --- zero-pad to tile multiples (handles non-multiple B/C/D safely) ----
    if (Bp, Dp) != (B, D):
        x_mm = jnp.pad(x_mm, ((0, Bp - B), (0, Dp - D)))
    if (Dp, Cp) != (D, C):
        w_mm = jnp.pad(w_mm, ((0, Dp - D), (0, Cp - C)))
    side = jnp.concatenate([inv_xn, cos_m, sin_m, thr, mm], axis=1)     # (B,5)
    side = jnp.pad(side.astype(jnp.float32),
                   ((0, Bp - B), (0, 128 - side.shape[1])))             # (Bp,128)
    inv_wn_p = jnp.pad(inv_wn, ((0, 0), (0, Cp - C)), constant_values=1.0)

    # --- tiled fused matmul + margin kernel ---------------------------------
    grid = (Bp // tm, Cp // tn, Dp // tk)
    vmem_est = (2 * ((tm * tk + tk * tn) * in_item
                     + 2 * tm * tn * out_item
                     + tm * 128 * 4 + tn * 4)
                + tm * tn * 4)
    vmem_limit = int(min(max(vmem_est * 1.2, 32 * 1024 * 1024),
                         56 * 1024 * 1024))

    cost = pl.CostEstimate(
        flops=2 * Bp * Dp * Cp,
        transcendentals=0,
        bytes_accessed=(Bp * Dp + Dp * Cp) * in_item + 2 * Bp * Cp * out_item)

    cos_theta, cos_theta_m = pl.pallas_call(
        functools.partial(_maglinear_kernel, scale=float(scale),
                          easy_margin=bool(easy_margin)),
        grid=grid,
        in_specs=[
            pl.BlockSpec((tm, tk), lambda i, j, k: (i, k)),    # x
            pl.BlockSpec((tk, tn), lambda i, j, k: (k, j)),    # weight
            pl.BlockSpec((tm, 128), lambda i, j, k: (i, 0)),   # packed per-row side
            pl.BlockSpec((1, tn), lambda i, j, k: (0, j)),     # 1/||w_col||
        ],
        out_specs=(pl.BlockSpec((tm, tn), lambda i, j, k: (i, j)),
                   pl.BlockSpec((tm, tn), lambda i, j, k: (i, j))),
        out_shape=(jax.ShapeDtypeStruct((Bp, Cp), out_dtype),
                   jax.ShapeDtypeStruct((Bp, Cp), out_dtype)),
        scratch_shapes=[pltpu.VMEM((tm, tn), jnp.float32)],
        compiler_params=pltpu.CompilerParams(
            dimension_semantics=("parallel", "parallel", "arbitrary"),
            vmem_limit_bytes=vmem_limit),
        cost_estimate=cost,
    )(x_mm, w_mm, side, inv_wn_p)

    if (Bp, Cp) != (B, C):
        cos_theta = cos_theta[:B, :C]
        cos_theta_m = cos_theta_m[:B, :C]
    return [cos_theta, cos_theta_m], x_norm


# ---------------------------------------------------------------------------
# pure-JAX reference (mirrors the PyTorch forward) for a quick sanity check
# ---------------------------------------------------------------------------
def _mag_linear_ref(x, weight, m, l_a, u_a, *, scale=64.0, easy_margin=True):
    xn = jnp.linalg.norm(x, axis=1, keepdims=True)
    x_norm = jnp.clip(xn, l_a, u_a)
    ada = m(x_norm)
    cos_m, sin_m = jnp.cos(ada), jnp.sin(ada)
    w_n = weight / jnp.maximum(jnp.linalg.norm(weight, axis=0, keepdims=True), 1e-12)
    x_n = x / jnp.maximum(xn, 1e-12)
    cos = jnp.clip(x_n @ w_n, -1.0, 1.0)
    sin = jnp.sqrt(jnp.maximum(1.0 - cos * cos, 0.0))
    ctm = cos * cos_m - sin * sin_m
    if easy_margin:
        thr = jnp.zeros_like(ada)
        ctm = jnp.where(cos > 0, ctm, cos)
    else:
        mm_ = jnp.sin(jnp.pi - ada) * ada
        thr = jnp.cos(jnp.pi - ada)
        ctm = jnp.where(cos > thr, ctm, cos - mm_)
    return [scale * cos, scale * ctm], x_norm, thr


if __name__ == "__main__":
    key = jax.random.PRNGKey(0)
    SCALE = 64.0
    L_A, U_A = 10.0, 110.0
    L_M, U_M = 0.45, 0.8

    def m_fn(x_norm):               # standard MagFace linear adaptive margin
        return (U_M - L_M) / (U_A - L_A) * (x_norm - L_A) + L_M

    # Two shapes: tile-aligned, and one that exercises the padding path.
    for (B, D, C) in [(16, 512, 512), (12, 300, 200)]:
        kx, kw = jax.random.split(jax.random.fold_in(key, B * 1000 + C))
        x = jax.random.normal(kx, (B, D), jnp.float32) * 3.0
        weight = jax.random.uniform(kw, (D, C), jnp.float32,
                                    minval=-1.0, maxval=1.0)

        for easy in (True, False):
            (cos_r, cosm_r), xn_r, thr_r = _mag_linear_ref(
                x, weight, m_fn, L_A, U_A, scale=SCALE, easy_margin=easy)

            for use_bf16 in (False, True):
                (cos_k, cosm_k), xn_k = mag_linear(
                    x, weight, m_fn, L_A, U_A, scale=SCALE, easy_margin=easy,
                    use_bf16_matmul=use_bf16)
                jax.block_until_ready((cos_k, cosm_k, xn_k))

                atol = 0.5 if use_bf16 else 5e-2
                rtol = 1e-2 if use_bf16 else 1e-3
                near_eps = 5e-3 if use_bf16 else 1e-3

                assert jnp.allclose(xn_k, xn_r, atol=1e-4), "x_norm mismatch"
                assert jnp.allclose(cos_k, cos_r, atol=atol, rtol=rtol), (
                    "cos_theta mismatch", easy, use_bf16)
                # cos_theta_m: ignore entries within near_eps of the margin
                # threshold, where a tiny matmul rounding difference can
                # legitimately flip the where() branch.
                near = jnp.abs(cos_r / SCALE - thr_r) < near_eps
                err = jnp.where(near, 0.0, jnp.abs(cosm_k - cosm_r))
                assert float(jnp.max(err)) < atol, (
                    "cos_theta_m mismatch", easy, use_bf16, float(jnp.max(err)))

    print("KERNEL_OK")
</pallas_src>

<mosaic_0001>
module attributes {stable_mosaic.version = 11 : i64} {
  func.func @_maglinear_kernel(%arg0: i32, %arg1: i32, %arg2: i32, %arg3: memref<16x512xf32, #tpu.memory_space<vmem>>, %arg4: memref<512x512xf32, #tpu.memory_space<vmem>>, %arg5: memref<16x128xf32, #tpu.memory_space<vmem>>, %arg6: memref<1x512xf32, #tpu.memory_space<vmem>>, %arg7: memref<16x512xf32, #tpu.memory_space<vmem>>, %arg8: memref<16x512xf32, #tpu.memory_space<vmem>>, %arg9: memref<16x512xf32, #tpu.memory_space<vmem>>) attributes {dimension_semantics = [#tpu.dimension_semantics<parallel>, #tpu.dimension_semantics<parallel>, #tpu.dimension_semantics<arbitrary>], iteration_bounds = array<i64: 1, 1, 1>, scalar_prefetch = 0 : i64, scratch_operands = 1 : i64, tpu.core_type = #tpu.core_type<tc>, window_params = [{transform_indices = @transform_0, window_bounds = array<i64: 16, 512>}, {transform_indices = @transform_1, window_bounds = array<i64: 512, 512>}, {transform_indices = @transform_2, window_bounds = array<i64: 16, 128>}, {transform_indices = @transform_3, window_bounds = array<i64: 1, 512>}, {transform_indices = @transform_4, window_bounds = array<i64: 16, 512>}, {transform_indices = @transform_5, window_bounds = array<i64: 16, 512>}]} {
    %c0_i32 = arith.constant 0 : i32
    %0 = arith.cmpi eq, %arg2, %c0_i32 : i32
    %1 = arith.extui %0 : i1 to i32
    %c0_i32_0 = arith.constant 0 : i32
    %2 = arith.cmpi ne, %1, %c0_i32_0 : i32
    scf.if %2 {
      %cst_10 = arith.constant 0.000000e+00 : f32
      %12 = vector.broadcast %cst_10 : f32 to vector<16x512xf32>
      %c0_11 = arith.constant 0 : index
      %c0_12 = arith.constant 0 : index
      %13 = vector.load %arg9[%c0_11, %c0_12] : memref<16x512xf32, #tpu.memory_space<vmem>>, vector<16x512xf32>
      tpu.vector_store %arg9[%c0_11, %c0_12], %12 {strides = array<i32>} : memref<16x512xf32, #tpu.memory_space<vmem>>, vector<16x512xf32>,
    } else {
    }
    %c0 = arith.constant 0 : index
    %c0_1 = arith.constant 0 : index
    %3 = vector.load %arg9[%c0, %c0_1] : memref<16x512xf32, #tpu.memory_space<vmem>>, vector<16x512xf32>
    %c0_2 = arith.constant 0 : index
    %c0_3 = arith.constant 0 : index
    %4 = vector.load %arg3[%c0_2, %c0_3] : memref<16x512xf32, #tpu.memory_space<vmem>>, vector<16x512xf32>
    %c0_4 = arith.constant 0 : index
    %c0_5 = arith.constant 0 : index
    %5 = vector.load %arg4[%c0_4, %c0_5] : memref<512x512xf32, #tpu.memory_space<vmem>>, vector<512x512xf32>
    %cst = arith.constant dense<0.000000e+00> : vector<16x512xf32>
    %6 = tpu.matmul %4, %5, %cst {dimension_numbers = #tpu.dot_dimension_numbers<[1], [0], [0], [1], [0, 0, 1, 1], [], []>} : vector<16x512xf32>, vector<512x512xf32>, vector<16x512xf32> -> vector<16x512xf32>
    %7 = arith.addf %3, %6 : vector<16x512xf32>
    %c0_6 = arith.constant 0 : index
    %c0_7 = arith.constant 0 : index
    %8 = vector.load %arg9[%c0_6, %c0_7] : memref<16x512xf32, #tpu.memory_space<vmem>>, vector<16x512xf32>
    tpu.vector_store %arg9[%c0_6, %c0_7], %7 {strides = array<i32>} : memref<16x512xf32, #tpu.memory_space<vmem>>, vector<16x512xf32>,
    %c0_i32_8 = arith.constant 0 : i32
    %9 = arith.cmpi eq, %arg2, %c0_i32_8 : i32
    %10 = arith.extui %9 : i1 to i32
    %c0_i32_9 = arith.constant 0 : i32
    %11 = arith.cmpi ne, %10, %c0_i32_9 : i32
    scf.if %11 {
      %c0_10 = arith.constant 0 : index
      %c0_11 = arith.constant 0 : index
      %12 = vector.load %arg5[%c0_10, %c0_11] : memref<16x128xf32, #tpu.memory_space<vmem>>, vector<16x1xf32>
      %c0_12 = arith.constant 0 : index
      %c1 = arith.constant 1 : index
      %13 = vector.load %arg5[%c0_12, %c1] : memref<16x128xf32, #tpu.memory_space<vmem>>, vector<16x1xf32>
      %c0_13 = arith.constant 0 : index
      %c2 = arith.constant 2 : index
      %14 = vector.load %arg5[%c0_13, %c2] : memref<16x128xf32, #tpu.memory_space<vmem>>, vector<16x1xf32>
      %c0_14 = arith.constant 0 : index
      %c0_15 = arith.constant 0 : index
      %15 = vector.load %arg9[%c0_14, %c0_15] : memref<16x512xf32, #tpu.memory_space<vmem>>, vector<16x512xf32>
      %16 = vector.broadcast %12 : vector<16x1xf32> to vector<16x512xf32>
      %17 = arith.mulf %15, %16 : vector<16x512xf32>
      %c0_16 = arith.constant 0 : index
      %c0_17 = arith.constant 0 : index
      %18 = vector.load %arg6[%c0_16, %c0_17] : memref<1x512xf32, #tpu.memory_space<vmem>>, vector<1x512xf32>
      %19 = vector.broadcast %18 : vector<1x512xf32> to vector<16x512xf32>
      %20 = arith.mulf %17, %19 : vector<16x512xf32>
      %cst_18 = arith.constant -1.000000e+00 : f32
      %cst_19 = arith.constant 1.000000e+00 : f32
      %21 = vector.broadcast %cst_18 : f32 to vector<16x512xf32>
      %22 = arith.maximumf %21, %20 : vector<16x512xf32>
      %23 = vector.broadcast %cst_19 : f32 to vector<16x512xf32>
      %24 = arith.minimumf %23, %22 : vector<16x512xf32>
      %25 = arith.mulf %24, %24 : vector<16x512xf32>
      %cst_20 = arith.constant 1.000000e+00 : f32
      %26 = vector.broadcast %cst_20 : f32 to vector<16x512xf32>
      %27 = arith.subf %26, %25 : vector<16x512xf32>
      %cst_21 = arith.constant 0.000000e+00 : f32
      %28 = vector.broadcast %cst_21 : f32 to vector<16x512xf32>
      %29 = arith.maximumf %27, %28 : vector<16x512xf32>
      %30 = math.sqrt %29 : vector<16x512xf32>
      %31 = vector.broadcast %13 : vector<16x1xf32> to vector<16x512xf32>
      %32 = arith.mulf %24, %31 : vector<16x512xf32>
      %33 = vector.broadcast %14 : vector<16x1xf32> to vector<16x512xf32>
      %34 = arith.mulf %30, %33 : vector<16x512xf32>
      %35 = arith.subf %32, %34 : vector<16x512xf32>
      %cst_22 = arith.constant 0.000000e+00 : f32
      %36 = vector.broadcast %cst_22 : f32 to vector<16x512xf32>
      %37 = arith.cmpf ogt, %24, %36 : vector<16x512xf32>
      %38 = arith.select %37, %35, %24 : vector<16x512xi1>, vector<16x512xf32>
      %cst_23 = arith.constant 6.400000e+01 : f32
      %39 = vector.broadcast %cst_23 : f32 to vector<16x512xf32>
      %40 = arith.mulf %39, %24 : vector<16x512xf32>
      %c0_24 = arith.constant 0 : index
      %c0_25 = arith.constant 0 : index
      %41 = vector.load %arg7[%c0_24, %c0_25] : memref<16x512xf32, #tpu.memory_space<vmem>>, vector<16x512xf32>
      tpu.vector_store %arg7[%c0_24, %c0_25], %40 {strides = array<i32>} : memref<16x512xf32, #tpu.memory_space<vmem>>, vector<16x512xf32>,
      %cst_26 = arith.constant 6.400000e+01 : f32
      %42 = vector.broadcast %cst_26 : f32 to vector<16x512xf32>
      %43 = arith.mulf %42, %38 : vector<16x512xf32>
      %c0_27 = arith.constant 0 : index
      %c0_28 = arith.constant 0 : index
      %44 = vector.load %arg8[%c0_27, %c0_28] : memref<16x512xf32, #tpu.memory_space<vmem>>, vector<16x512xf32>
      tpu.vector_store %arg8[%c0_27, %c0_28], %43 {strides = array<i32>} : memref<16x512xf32, #tpu.memory_space<vmem>>, vector<16x512xf32>,
    } else {
    }
    return
  }
  func.func @transform_0(%arg0: i32, %arg1: i32, %arg2: i32) -> (i32, i32) {
    %c0_i32 = arith.constant 0 : i32
    return %arg0, %arg2 : i32, i32
  }
  func.func @transform_1(%arg0: i32, %arg1: i32, %arg2: i32) -> (i32, i32) {
    %c0_i32 = arith.constant 0 : i32
    return %arg2, %arg1 : i32, i32
  }
  func.func @transform_2(%arg0: i32, %arg1: i32, %arg2: i32) -> (i32, i32) {
    %c0_i32 = arith.constant 0 : i32
    %c0_i32_0 = arith.constant 0 : i32
    return %arg0, %c0_i32 : i32, i32
  }
  func.func @transform_3(%arg0: i32, %arg1: i32, %arg2: i32) -> (i32, i32) {
    %c0_i32 = arith.constant 0 : i32
    %c0_i32_0 = arith.constant 0 : i32
    return %c0_i32, %arg1 : i32, i32
  }
  func.func @transform_4(%arg0: i32, %arg1: i32, %arg2: i32) -> (i32, i32) {
    %c0_i32 = arith.constant 0 : i32
    return %arg0, %arg1 : i32, i32
  }
  func.func @transform_5(%arg0: i32, %arg1: i32, %arg2: i32) -> (i32, i32) {
    %c0_i32 = arith.constant 0 : i32
    return %arg0, %arg1 : i32, i32
  }
}

</mosaic_0001>

<bundles_post_ra>
// kernel: tpu_custom_call.1
= control target key start
LH: loop header
LB: loop body
LE: loop exit
PB: predicated region body
PF: predicated region fallthrough
CT: control target
= control target key end

     0   :  { %11 = vsyncpa [#allocation4], 0  ;;  %s1690_s0 = inlined_call_operand.hbm [shape: f32[16,512], index: 0, kind: input, shape index: {}]   ;;  %s1691_s1 = inlined_call_operand.hbm [shape: f32[512,512], index: 1, kind: input, shape index: {}]   ;;  %s1692_s2 = inlined_call_operand.hbm [shape: f32[16,128], index: 2, kind: input, shape index: {}]   ;;  %s1693_s3 = inlined_call_operand.vmem [shape: f32[1,512], index: 3, kind: input, shape index: {}]   ;;  %s1694_s4 = inlined_call_operand.hbm [shape: f32[16,512], index: 4, kind: output, shape index: {0}]   ;;  %s1695_s5 = inlined_call_operand.hbm [shape: f32[16,512], index: 5, kind: output, shape index: {1}]  }
   0x1   :  { %12 = vsyncpa [#allocation7], 0 }
   0x2   :  { %13 = vsyncpa [#allocation5], 0 }
   0x3   :  { %14 = vsyncpa [#allocation11], 0  ;;  %s1371_s18 = smov [#allocation6]   ;;  %s1372_s20 = smov [#allocation3]  }
   0x4   :  { %s32_s19 = sshll.u32 %s1371_s18, 4  ;;  %s20_s21 = sshll.u32 %s1372_s20, 4  ;;  %s33_s19 = int_to_ptr.vmem [resolvable:$true] %s32_s19  ;;  %s1413_s21 = int_to_ptr.vmem [resolvable:$true] %s20_s21 }
   0x5   :  { %s1253_s24 = scalar_lea.hbm %s1691_s1, 32768 }
   0x6   :  { %p1254_p0 = scmp.ne.s32.totalorder %s1691_s1, %s1253_s24  ;;  %p1257_p1 = scmp.lt.u32.totalorder %s1253_s24, %s1691_s1 }
   0x8   :  { %p1259_p2 = pnand %p1257_p1, %p1254_p0 }
   0xa   :  { %1262 = shalt.err (!%p1259_p2)
}
   0xb   :  { %s1263_s29 = scalar_lea.vmem %s33_s19, 32768  ;;  %p1268_p4 = scmp.lt.s32.totalorder %s33_s19, %s33_s19 }
   0xc   :  { %p1264_p3 = scmp.ne.s32.totalorder %s33_s19, %s1263_s29  ;;  %p1269_p5 = scmp.lt.s32.totalorder %s1263_s29, %s1263_s29 }
   0xe   :  { %p1270_p6 = por %p1269_p5, %p1268_p4 }
  0x10   :  { %p1271_p7 = pnand %p1270_p6, %p1264_p3 }
  0x12   :  { %1274 = shalt.err (!%p1271_p7)
}
  0x13   :  { %s1373_s30 = smov 512   ;;  %s1374_s6 = smov 32  }
  0x14   :  { %38 = dma.hbm_to_vmem [thread:$0]  %s1691_s1, 32768, %s33_s19, [#allocation7], %s1373_s30, %s1373_s30, %s1374_s6  }
  0x15   :  { %s1275_s11 = scalar_lea.hbm %s1690_s0, 1024 }
  0x16   :  { %p1276_p8 = scmp.ne.s32.totalorder %s1690_s0, %s1275_s11  ;;  %p1279_p9 = scmp.lt.u32.totalorder %s1275_s11, %s1690_s0 }
  0x18   :  { %p1281_p10 = pnand %p1279_p9, %p1276_p8 }
  0x1a   :  { %1284 = shalt.err (!%p1281_p10)
}
  0x1b   :  { %s1285_s16 = scalar_lea.vmem %s1413_s21, 1024  ;;  %p1290_p12 = scmp.lt.s32.totalorder %s1413_s21, %s1413_s21 }
  0x1c   :  { %p1286_p11 = scmp.ne.s32.totalorder %s1413_s21, %s1285_s16  ;;  %p1291_p13 = scmp.lt.s32.totalorder %s1285_s16, %s1285_s16 }
  0x1e   :  { %p1292_p0 = por %p1291_p13, %p1290_p12 }
  0x20   :  { %p1293_p1 = pnand %p1292_p0, %p1286_p11 }
  0x22   :  { %1296 = shalt.err (!%p1293_p1)
}
  0x23   :  { %26 = dma.hbm_to_vmem [thread:$0]  %s1690_s0, 1024, %s1413_s21, [#allocation4], %s1373_s30, %s1373_s30, %s1374_s6  }
  0x24   :  { %s1375_s18 = smov [#allocation8]   ;;  %s1297_s23 = scalar_lea.hbm %s1692_s2, 256 }
  0x25   :  { %s44_s19 = sshll.u32 %s1375_s18, 4  ;;  %p1298_p2 = scmp.ne.s32.totalorder %s1692_s2, %s1297_s23  ;;  %s45_s19 = int_to_ptr.vmem [resolvable:$true] %s44_s19 }
  0x26   :  { %p1301_p3 = scmp.lt.u32.totalorder %s1297_s23, %s1692_s2 }
  0x28   :  { %p1303_p4 = pnand %p1301_p3, %p1298_p2 }
  0x2a   :  { %1306 = shalt.err (!%p1303_p4)
}
  0x2b   :  { %s1307_s28 = scalar_lea.vmem %s45_s19, 256  ;;  %p1312_p6 = scmp.lt.s32.totalorder %s45_s19, %s45_s19 }
  0x2c   :  { %p1308_p5 = scmp.ne.s32.totalorder %s45_s19, %s1307_s28  ;;  %p1313_p7 = scmp.lt.s32.totalorder %s1307_s28, %s1307_s28 }
  0x2e   :  { %p1314_p8 = por %p1313_p7, %p1312_p6 }
  0x30   :  { %p1315_p9 = pnand %p1314_p8, %p1308_p5 }
  0x32   :  { %1318 = shalt.err (!%p1315_p9)
}
  0x33   :  { %s1376_s0 = smov 128   ;;  %s1377_s21 = smov 8  }
  0x34   :  { %50 = dma.hbm_to_vmem [thread:$0]  %s1692_s2, 256, %s45_s19, [#allocation7], %s1376_s0, %s1376_s0, %s1377_s21  }
  0x35   :  { %1363 = dma.done.wait [#allocation4], 1024  }
  0x36   :  { %1364 = vsyncadd [#allocation4], 4294966272 }
  0x37   :  { %1365 = dma.done.wait [#allocation7], 33024  }
  0x38   :  { %1366 = vsyncadd [#allocation7], 4294934272  ;;  %v91_v0 = vld [vmem:[#allocation6 + $0x8] sm:$0xff]  ;;  %v93_v2 = vld [vmem:[#allocation6 + $0x18] sm:$0xff]  ;;  %v1378_v47 = vmov 0   ;;  %v1379_v51 = vmov 1  }
  0x39   :  { %v95_v1 = vld [vmem:[#allocation6 + $0x28] sm:$0xff]  ;;  %v97_v4 = vld [vmem:[#allocation6 + $0x38] sm:$0xff]  ;;  %v90_v5 = vld [vmem:[#allocation6] sm:$0xff]  ;;  %1233 = vset.pattern.permute.xlu0 %v1378_v47  ;;  %1234 = vset.pattern.permute.xlu1 %v1379_v51 }
  0x3a   :  { %v957_v3 = vpack.c.bf16 %v95_v1, %v91_v0  ;;  %v94_v6 = vld [vmem:[#allocation6 + $0x20] sm:$0xff]  ;;  %v1085_v7 = vpack.c.bf16 %v97_v4, %v93_v2  ;;  %v92_v9 = vld [vmem:[#allocation6 + $0x10] sm:$0xff]  ;;  %v99_v11 = vld [vmem:[#allocation6 + $0x48] sm:$0xff] }
  0x3b   :  { %v959_v8 = vpack.c.bf16 %v94_v6, %v90_v5  ;;  %v96_v10 = vld [vmem:[#allocation6 + $0x30] sm:$0xff]  ;;  %v103_v13 = vld [vmem:[#allocation6 + $0x68] sm:$0xff]  ;;  %v101_v14 = vld [vmem:[#allocation6 + $0x58] sm:$0xff] }
  0x3c   :  { %958 = vmatprep.subr.bf16.mxu0 %v957_v3  ;;  %v1087_v12 = vpack.c.bf16 %v96_v10, %v92_v9  ;;  %v105_v15 = vld [vmem:[#allocation6 + $0x78] sm:$0xff]  ;;  %1086 = vmatprep.subr.bf16.mxu1 %v1085_v7  ;;  %v961_v16 = vpack.c.bf16 %v103_v13, %v99_v11  ;;  %v98_v18 = vld [vmem:[#allocation6 + $0x40] sm:$0xff]  ;;  %v100_v20 = vld [vmem:[#allocation6 + $0x50] sm:$0xff] }
  0x3d   :  { %960 = vmatpush1.bf16.msra.mxu0 %v959_v8  ;;  %v1089_v17 = vpack.c.bf16 %v105_v15, %v101_v14  ;;  %v102_v19 = vld [vmem:[#allocation6 + $0x60] sm:$0xff]  ;;  %v104_v22 = vld [vmem:[#allocation6 + $0x70] sm:$0xff]  ;;  %v107_v23 = vld [vmem:[#allocation6 + $0x88] sm:$0xff] }
  0x3e   :  { %1088 = vmatpush1.bf16.msra.mxu1 %v1087_v12  ;;  %v963_v21 = vpack.c.bf16 %v102_v19, %v98_v18  ;;  %v111_v24 = vld [vmem:[#allocation6 + $0xa8] sm:$0xff]  ;;  %962 = vmatprep.subr.bf16.mxu0 %v961_v16  ;;  %v1091_v25 = vpack.c.bf16 %v104_v22, %v100_v20  ;;  %v109_v27 = vld [vmem:[#allocation6 + $0x98] sm:$0xff]  ;;  %v106_v29 = vld [vmem:[#allocation6 + $0x80] sm:$0xff] }
  0x3f   :  { %1090 = vmatprep.subr.bf16.mxu1 %v1089_v17  ;;  %v965_v26 = vpack.c.bf16 %v111_v24, %v107_v23  ;;  %v113_v28 = vld [vmem:[#allocation6 + $0xb8] sm:$0xff]  ;;  %v110_v31 = vld [vmem:[#allocation6 + $0xa0] sm:$0xff]  ;;  %v108_v32 = vld [vmem:[#allocation6 + $0x90] sm:$0xff] }
  0x40   :  { %v1093_v30 = vpack.c.bf16 %v113_v28, %v109_v27  ;;  %v112_v33 = vld [vmem:[#allocation6 + $0xb0] sm:$0xff]  ;;  %v967_v34 = vpack.c.bf16 %v110_v31, %v106_v29  ;;  %v115_v35 = vld [vmem:[#allocation6 + $0xc8] sm:$0xff]  ;;  %v117_v37 = vld [vmem:[#allocation6 + $0xd8] sm:$0xff] }
  0x41   :  { %964 = vmatpush1.bf16.msra.mxu0 %v963_v21  ;;  %v119_v36 = vld [vmem:[#allocation6 + $0xe8] sm:$0xff]  ;;  %v1095_v38 = vpack.c.bf16 %v112_v33, %v108_v32  ;;  %v121_v40 = vld [vmem:[#allocation6 + $0xf8] sm:$0xff]  ;;  %v114_v41 = vld [vmem:[#allocation6 + $0xc0] sm:$0xff] }
  0x42   :  { %1092 = vmatpush1.bf16.msra.mxu1 %v1091_v25  ;;  %966 = vmatprep.subr.bf16.mxu0 %v965_v26  ;;  %v969_v39 = vpack.c.bf16 %v119_v36, %v115_v35  ;;  %v118_v42 = vld [vmem:[#allocation6 + $0xe0] sm:$0xff]  ;;  %v1097_v43 = vpack.c.bf16 %v121_v40, %v117_v37  ;;  %v116_v44 = vld [vmem:[#allocation6 + $0xd0] sm:$0xff]  ;;  %v123_v46 = vld [vmem:[#allocation6 + $0x108] sm:$0xff] }
  0x43   :  { %1094 = vmatprep.subr.bf16.mxu1 %v1093_v30  ;;  %v120_v45 = vld [vmem:[#allocation6 + $0xf0] sm:$0xff]  ;;  %v127_v48 = vld [vmem:[#allocation6 + $0x128] sm:$0xff]  ;;  %v125_v49 = vld [vmem:[#allocation6 + $0x118] sm:$0xff]  ;;  %v971_v52 = vpack.c.bf16 %v118_v42, %v114_v41 }
  0x44   :  { %v129_v50 = vld [vmem:[#allocation6 + $0x138] sm:$0xff]  ;;  %v1099_v53 = vpack.c.bf16 %v120_v45, %v116_v44  ;;  %v973_v54 = vpack.c.bf16 %v127_v48, %v123_v46  ;;  %v122_v55 = vld [vmem:[#allocation6 + $0x100] sm:$0xff]  ;;  %v124_v57 = vld [vmem:[#allocation6 + $0x110] sm:$0xff] }
  0x45   :  { %968 = vmatpush1.bf16.msra.mxu0 %v967_v34  ;;  %v126_v56 = vld [vmem:[#allocation6 + $0x120] sm:$0xff]  ;;  %v1101_v58 = vpack.c.bf16 %v129_v50, %v125_v49  ;;  %v128_v59 = vld [vmem:[#allocation6 + $0x130] sm:$0xff]  ;;  %v131_v60 = vld [vmem:[#allocation6 + $0x148] sm:$0xff] }
  0x46   :  { %1096 = vmatpush1.bf16.msra.mxu1 %v1095_v38  ;;  %970 = vmatprep.subr.bf16.mxu0 %v969_v39  ;;  %v135_v61 = vld [vmem:[#allocation6 + $0x168] sm:$0xff]  ;;  %v133_v62 = vld [vmem:[#allocation6 + $0x158] sm:$0xff]  ;;  %v975_v0 = vpack.c.bf16 %v126_v56, %v122_v55  ;;  %v1103_v1 = vpack.c.bf16 %v128_v59, %v124_v57  ;;  %v130_v3 = vld [vmem:[#allocation6 + $0x140] sm:$0xff] }
  0x47   :  { %1098 = vmatprep.subr.bf16.mxu1 %v1097_v43  ;;  %v137_v63 = vld [vmem:[#allocation6 + $0x178] sm:$0xff]  ;;  %v977_v2 = vpack.c.bf16 %v135_v61, %v131_v60  ;;  %v134_v4 = vld [vmem:[#allocation6 + $0x160] sm:$0xff]  ;;  %v132_v5 = vld [vmem:[#allocation6 + $0x150] sm:$0xff] }
  0x48   :  { %v1105_v6 = vpack.c.bf16 %v137_v63, %v133_v62  ;;  %v136_v7 = vld [vmem:[#allocation6 + $0x170] sm:$0xff]  ;;  %v139_v8 = vld [vmem:[#allocation6 + $0x188] sm:$0xff]  ;;  %v141_v10 = vld [vmem:[#allocation6 + $0x198] sm:$0xff]  ;;  %v979_v12 = vpack.c.bf16 %v134_v4, %v130_v3 }
  0x49   :  { %972 = vmatpush1.bf16.msra.mxu0 %v971_v52  ;;  %v143_v9 = vld [vmem:[#allocation6 + $0x1a8] sm:$0xff]  ;;  %v145_v11 = vld [vmem:[#allocation6 + $0x1b8] sm:$0xff]  ;;  %v1107_v13 = vpack.c.bf16 %v136_v7, %v132_v5  ;;  %v138_v15 = vld [vmem:[#allocation6 + $0x180] sm:$0xff] }
  0x4a   :  { %1100 = vmatpush1.bf16.msra.mxu1 %v1099_v53  ;;  %974 = vmatprep.subr.bf16.mxu0 %v973_v54  ;;  %v981_v14 = vpack.c.bf16 %v143_v9, %v139_v8  ;;  %v142_v16 = vld [vmem:[#allocation6 + $0x1a0] sm:$0xff]  ;;  %v140_v17 = vld [vmem:[#allocation6 + $0x190] sm:$0xff]  ;;  %v1109_v18 = vpack.c.bf16 %v145_v11, %v141_v10  ;;  %v147_v20 = vld [vmem:[#allocation6 + $0x1c8] sm:$0xff] }
  0x4b   :  { %1102 = vmatprep.subr.bf16.mxu1 %v1101_v58  ;;  %v144_v19 = vld [vmem:[#allocation6 + $0x1b0] sm:$0xff]  ;;  %v151_v21 = vld [vmem:[#allocation6 + $0x1e8] sm:$0xff]  ;;  %v149_v22 = vld [vmem:[#allocation6 + $0x1d8] sm:$0xff]  ;;  %v983_v24 = vpack.c.bf16 %v142_v16, %v138_v15 }
  0x4c   :  { %v153_v23 = vld [vmem:[#allocation6 + $0x1f8] sm:$0xff]  ;;  %v1111_v25 = vpack.c.bf16 %v144_v19, %v140_v17  ;;  %v985_v26 = vpack.c.bf16 %v151_v21, %v147_v20  ;;  %v146_v27 = vld [vmem:[#allocation6 + $0x1c0] sm:$0xff]  ;;  %v148_v29 = vld [vmem:[#allocation6 + $0x1d0] sm:$0xff] }
  0x4d   :  { %976 = vmatpush1.bf16.msra.mxu0 %v975_v0  ;;  %v150_v28 = vld [vmem:[#allocation6 + $0x1e0] sm:$0xff]  ;;  %v1113_v30 = vpack.c.bf16 %v153_v23, %v149_v22  ;;  %v152_v31 = vld [vmem:[#allocation6 + $0x1f0] sm:$0xff]  ;;  %v155_v32 = vld [vmem:[#allocation6 + $0x208] sm:$0xff] }
  0x4e   :  { %1104 = vmatpush1.bf16.msra.mxu1 %v1103_v1  ;;  %978 = vmatprep.subr.bf16.mxu0 %v977_v2  ;;  %v159_v33 = vld [vmem:[#allocation6 + $0x228] sm:$0xff]  ;;  %v157_v34 = vld [vmem:[#allocation6 + $0x218] sm:$0xff]  ;;  %v987_v36 = vpack.c.bf16 %v150_v28, %v146_v27  ;;  %v1115_v37 = vpack.c.bf16 %v152_v31, %v148_v29  ;;  %v154_v39 = vld [vmem:[#allocation6 + $0x200] sm:$0xff] }
  0x4f   :  { %1106 = vmatprep.subr.bf16.mxu1 %v1105_v6  ;;  %v161_v35 = vld [vmem:[#allocation6 + $0x238] sm:$0xff]  ;;  %v989_v38 = vpack.c.bf16 %v159_v33, %v155_v32  ;;  %v158_v40 = vld [vmem:[#allocation6 + $0x220] sm:$0xff]  ;;  %v156_v41 = vld [vmem:[#allocation6 + $0x210] sm:$0xff] }
  0x50   :  { %v1117_v42 = vpack.c.bf16 %v161_v35, %v157_v34  ;;  %v160_v43 = vld [vmem:[#allocation6 + $0x230] sm:$0xff]  ;;  %v163_v44 = vld [vmem:[#allocation6 + $0x248] sm:$0xff]  ;;  %v165_v46 = vld [vmem:[#allocation6 + $0x258] sm:$0xff]  ;;  %v991_v48 = vpack.c.bf16 %v158_v40, %v154_v39 }
  0x51   :  { %980 = vmatpush1.bf16.msra.mxu0 %v979_v12  ;;  %v167_v45 = vld [vmem:[#allocation6 + $0x268] sm:$0xff]  ;;  %v169_v47 = vld [vmem:[#allocation6 + $0x278] sm:$0xff]  ;;  %v1119_v49 = vpack.c.bf16 %v160_v43, %v156_v41  ;;  %v162_v51 = vld [vmem:[#allocation6 + $0x240] sm:$0xff] }
  0x52   :  { %1108 = vmatpush1.bf16.msra.mxu1 %v1107_v13  ;;  %982 = vmatprep.subr.bf16.mxu0 %v981_v14  ;;  %v993_v50 = vpack.c.bf16 %v167_v45, %v163_v44  ;;  %v166_v52 = vld [vmem:[#allocation6 + $0x260] sm:$0xff]  ;;  %v164_v53 = vld [vmem:[#allocation6 + $0x250] sm:$0xff]  ;;  %v1121_v54 = vpack.c.bf16 %v169_v47, %v165_v46  ;;  %v171_v56 = vld [vmem:[#allocation6 + $0x288] sm:$0xff] }
  0x53   :  { %1110 = vmatprep.subr.bf16.mxu1 %v1109_v18  ;;  %v168_v55 = vld [vmem:[#allocation6 + $0x270] sm:$0xff]  ;;  %v175_v57 = vld [vmem:[#allocation6 + $0x2a8] sm:$0xff]  ;;  %v173_v58 = vld [vmem:[#allocation6 + $0x298] sm:$0xff]  ;;  %v995_v60 = vpack.c.bf16 %v166_v52, %v162_v51 }
  0x54   :  { %v177_v59 = vld [vmem:[#allocation6 + $0x2b8] sm:$0xff]  ;;  %v1123_v61 = vpack.c.bf16 %v168_v55, %v164_v53  ;;  %v997_v62 = vpack.c.bf16 %v175_v57, %v171_v56  ;;  %v170_v63 = vld [vmem:[#allocation6 + $0x280] sm:$0xff]  ;;  %v172_v1 = vld [vmem:[#allocation6 + $0x290] sm:$0xff] }
  0x55   :  { %984 = vmatpush1.bf16.msra.mxu0 %v983_v24  ;;  %v174_v0 = vld [vmem:[#allocation6 + $0x2a0] sm:$0xff]  ;;  %v1125_v2 = vpack.c.bf16 %v177_v59, %v173_v58  ;;  %v176_v3 = vld [vmem:[#allocation6 + $0x2b0] sm:$0xff]  ;;  %v179_v4 = vld [vmem:[#allocation6 + $0x2c8] sm:$0xff] }
  0x56   :  { %1112 = vmatpush1.bf16.msra.mxu1 %v1111_v25  ;;  %986 = vmatprep.subr.bf16.mxu0 %v985_v26  ;;  %v183_v5 = vld [vmem:[#allocation6 + $0x2e8] sm:$0xff]  ;;  %v181_v6 = vld [vmem:[#allocation6 + $0x2d8] sm:$0xff]  ;;  %v999_v8 = vpack.c.bf16 %v174_v0, %v170_v63  ;;  %v178_v9 = vld [vmem:[#allocation6 + $0x2c0] sm:$0xff]  ;;  %v1127_v10 = vpack.c.bf16 %v176_v3, %v172_v1 }
  0x57   :  { %1114 = vmatprep.subr.bf16.mxu1 %v1113_v30  ;;  %v185_v7 = vld [vmem:[#allocation6 + $0x2f8] sm:$0xff]  ;;  %v1001_v11 = vpack.c.bf16 %v183_v5, %v179_v4  ;;  %v182_v12 = vld [vmem:[#allocation6 + $0x2e0] sm:$0xff]  ;;  %v180_v13 = vld [vmem:[#allocation6 + $0x2d0] sm:$0xff] }
  0x58   :  { %v184_v14 = vld [vmem:[#allocation6 + $0x2f0] sm:$0xff]  ;;  %v1129_v15 = vpack.c.bf16 %v185_v7, %v181_v6  ;;  %v187_v16 = vld [vmem:[#allocation6 + $0x308] sm:$0xff]  ;;  %v189_v19 = vld [vmem:[#allocation6 + $0x318] sm:$0xff]  ;;  %v1003_v21 = vpack.c.bf16 %v182_v12, %v178_v9 }
  0x59   :  { %988 = vmatpush1.bf16.msra.mxu0 %v987_v36  ;;  %v191_v17 = vld [vmem:[#allocation6 + $0x328] sm:$0xff]  ;;  %v193_v20 = vld [vmem:[#allocation6 + $0x338] sm:$0xff]  ;;  %v1131_v22 = vpack.c.bf16 %v184_v14, %v180_v13  ;;  %v186_v24 = vld [vmem:[#allocation6 + $0x300] sm:$0xff] }
  0x5a   :  { %1116 = vmatpush1.bf16.msra.mxu1 %v1115_v37  ;;  %990 = vmatprep.subr.bf16.mxu0 %v989_v38  ;;  %v83_v18 = vld [vmem:[#allocation3 + $0x8] sm:$0xff]  ;;  %v1005_v23 = vpack.c.bf16 %v191_v17, %v187_v16  ;;  %v190_v25 = vld [vmem:[#allocation6 + $0x320] sm:$0xff]  ;;  %v188_v26 = vld [vmem:[#allocation6 + $0x310] sm:$0xff]  ;;  %v1133_v27 = vpack.c.bf16 %v193_v20, %v189_v19 }
  0x5b   :  { %1118 = vmatprep.subr.bf16.mxu1 %v1117_v42  ;;  %410 = vmatprep.mubr.f32.mxu0 %v83_v18  ;;  %v192_v28 = vld [vmem:[#allocation6 + $0x330] sm:$0xff]  ;;  %v195_v29 = vld [vmem:[#allocation6 + $0x348] sm:$0xff]  ;;  %v197_v31 = vld [vmem:[#allocation6 + $0x358] sm:$0xff]  ;;  %v1007_v33 = vpack.c.bf16 %v190_v25, %v186_v24 }
  0x5c   :  { %564 = vmatprep.mubr.f32.mxu1 %v83_v18  ;;  %v199_v30 = vld [vmem:[#allocation6 + $0x368] sm:$0xff]  ;;  %v201_v32 = vld [vmem:[#allocation6 + $0x378] sm:$0xff]  ;;  %v1135_v34 = vpack.c.bf16 %v192_v28, %v188_v26  ;;  %v194_v36 = vld [vmem:[#allocation6 + $0x340] sm:$0xff] }
  0x5d   :  { %992 = vmatpush1.bf16.msra.mxu0 %v991_v48  ;;  %v1009_v35 = vpack.c.bf16 %v199_v30, %v195_v29  ;;  %v198_v37 = vld [vmem:[#allocation6 + $0x360] sm:$0xff]  ;;  %v196_v38 = vld [vmem:[#allocation6 + $0x350] sm:$0xff]  ;;  %v1137_v39 = vpack.c.bf16 %v201_v32, %v197_v31  ;;  %v203_v41 = vld [vmem:[#allocation6 + $0x388] sm:$0xff] }
  0x5e   :  { %1120 = vmatpush1.bf16.msra.mxu1 %v1119_v49  ;;  %994 = vmatprep.subr.bf16.mxu0 %v993_v50  ;;  %v200_v40 = vld [vmem:[#allocation6 + $0x370] sm:$0xff]  ;;  %v207_v42 = vld [vmem:[#allocation6 + $0x3a8] sm:$0xff]  ;;  %v205_v43 = vld [vmem:[#allocation6 + $0x398] sm:$0xff]  ;;  %v1011_v45 = vpack.c.bf16 %v198_v37, %v194_v36 }
  0x5f   :  { %1122 = vmatprep.subr.bf16.mxu1 %v1121_v54  ;;  %v209_v44 = vld [vmem:[#allocation6 + $0x3b8] sm:$0xff]  ;;  %v1139_v46 = vpack.c.bf16 %v200_v40, %v196_v38  ;;  %v1013_v47 = vpack.c.bf16 %v207_v42, %v203_v41  ;;  %v202_v48 = vld [vmem:[#allocation6 + $0x380] sm:$0xff]  ;;  %v204_v50 = vld [vmem:[#allocation6 + $0x390] sm:$0xff] }
  0x60   :  { %v206_v49 = vld [vmem:[#allocation6 + $0x3a0] sm:$0xff]  ;;  %v1141_v51 = vpack.c.bf16 %v209_v44, %v205_v43  ;;  %v208_v52 = vld [vmem:[#allocation6 + $0x3b0] sm:$0xff]  ;;  %v211_v53 = vld [vmem:[#allocation6 + $0x3c8] sm:$0xff] }
  0x61   :  { %996 = vmatpush1.bf16.msra.mxu0 %v995_v60  ;;  %v215_v54 = vld [vmem:[#allocation6 + $0x3e8] sm:$0xff]  ;;  %v213_v55 = vld [vmem:[#allocation6 + $0x3d8] sm:$0xff]  ;;  %v1015_v57 = vpack.c.bf16 %v206_v49, %v202_v48  ;;  %v1143_v58 = vpack.c.bf16 %v208_v52, %v204_v50  ;;  %v210_v60 = vld [vmem:[#allocation6 + $0x3c0] sm:$0xff] }
  0x62   :  { %1124 = vmatpush1.bf16.msra.mxu1 %v1123_v61  ;;  %998 = vmatprep.subr.bf16.mxu0 %v997_v62  ;;  %v217_v56 = vld [vmem:[#allocation6 + $0x3f8] sm:$0xff]  ;;  %v1017_v59 = vpack.c.bf16 %v215_v54, %v211_v53  ;;  %v214_v61 = vld [vmem:[#allocation6 + $0x3e0] sm:$0xff]  ;;  %v212_v62 = vld [vmem:[#allocation6 + $0x3d0] sm:$0xff] }
  0x63   :  { %1126 = vmatprep.subr.bf16.mxu1 %v1125_v2  ;;  %v1145_v63 = vpack.c.bf16 %v217_v56, %v213_v55  ;;  %v216_v0 = vld [vmem:[#allocation6 + $0x3f0] sm:$0xff]  ;;  %v219_v1 = vld [vmem:[#allocation6 + $0x408] sm:$0xff]  ;;  %v221_v3 = vld [vmem:[#allocation6 + $0x418] sm:$0xff]  ;;  %v1019_v5 = vpack.c.bf16 %v214_v61, %v210_v60 }
  0x64   :  { %v223_v2 = vld [vmem:[#allocation6 + $0x428] sm:$0xff]  ;;  %v225_v4 = vld [vmem:[#allocation6 + $0x438] sm:$0xff]  ;;  %v1147_v6 = vpack.c.bf16 %v216_v0, %v212_v62  ;;  %v222_v9 = vld [vmem:[#allocation6 + $0x420] sm:$0xff] }
  0x65   :  { %1000 = vmatpush1.bf16.msra.mxu0 %v999_v8  ;;  %v1021_v7 = vpack.c.bf16 %v223_v2, %v219_v1  ;;  %v218_v8 = vld [vmem:[#allocation6 + $0x400] sm:$0xff]  ;;  %v224_v12 = vld [vmem:[#allocation6 + $0x430] sm:$0xff]  ;;  %v227_v13 = vld [vmem:[#allocation6 + $0x448] sm:$0xff] }
  0x66   :  { %1128 = vmatpush1.bf16.msra.mxu1 %v1127_v10  ;;  %1002 = vmatprep.subr.bf16.mxu0 %v1001_v11  ;;  %v220_v10 = vld [vmem:[#allocation6 + $0x410] sm:$0xff]  ;;  %v1149_v11 = vpack.c.bf16 %v225_v4, %v221_v3  ;;  %v231_v14 = vld [vmem:[#allocation6 + $0x468] sm:$0xff]  ;;  %v233_v16 = vld [vmem:[#allocation6 + $0x478] sm:$0xff]  ;;  %v1023_v18 = vpack.c.bf16 %v222_v9, %v218_v8 }
  0x67   :  { %1130 = vmatprep.subr.bf16.mxu1 %v1129_v15  ;;  %v229_v15 = vld [vmem:[#allocation6 + $0x458] sm:$0xff]  ;;  %v82_v17 = vld [vmem:[#allocation3] sm:$0xff]  ;;  %v1151_v19 = vpack.c.bf16 %v224_v12, %v220_v10  ;;  %v1025_v20 = vpack.c.bf16 %v231_v14, %v227_v13  ;;  %v232_v25 = vld [vmem:[#allocation6 + $0x470] sm:$0xff] }
  0x68   :  { %v1153_v24 = vpack.c.bf16 %v233_v16, %v229_v15  ;;  %v235_v26 = vld [vmem:[#allocation6 + $0x488] sm:$0xff]  ;;  %v237_v28 = vld [vmem:[#allocation6 + $0x498] sm:$0xff]  ;;  %v240_v37 = vld [vmem:[#allocation6 + $0x4b0] sm:$0xff] }
  0x69   :  { %1004 = vmatpush1.bf16.msra.mxu0 %v1003_v21  ;;  %v226_v21 = vld [vmem:[#allocation6 + $0x440] sm:$0xff]  ;;  %v241_v29 = vld [vmem:[#allocation6 + $0x4b8] sm:$0xff]  ;;  %v243_v38 = vld [vmem:[#allocation6 + $0x4c8] sm:$0xff] }
  0x6a   :  { %1132 = vmatpush1.bf16.msra.mxu1 %v1131_v22  ;;  %1006 = vmatprep.subr.bf16.mxu0 %v1005_v23  ;;  %v230_v22 = vld [vmem:[#allocation6 + $0x460] sm:$0xff]  ;;  %v228_v23 = vld [vmem:[#allocation6 + $0x450] sm:$0xff]  ;;  %v1157_v36 = vpack.c.bf16 %v241_v29, %v237_v28  ;;  %v245_v40 = vld [vmem:[#allocation6 + $0x4d8] sm:$0xff] }
  0x6b   :  { %1134 = vmatprep.subr.bf16.mxu1 %v1133_v27  ;;  %v239_v27 = vld [vmem:[#allocation6 + $0x4a8] sm:$0xff]  ;;  %v1027_v30 = vpack.c.bf16 %v230_v22, %v226_v21  ;;  %v1155_v31 = vpack.c.bf16 %v232_v25, %v228_v23  ;;  %v249_v41 = vld [vmem:[#allocation6 + $0x4f8] sm:$0xff]  ;;  %v248_v49 = vld [vmem:[#allocation6 + $0x4f0] sm:$0xff] }
  0x6c   :  { %v1029_v32 = vpack.c.bf16 %v239_v27, %v235_v26  ;;  %v1161_v48 = vpack.c.bf16 %v249_v41, %v245_v40  ;;  %v251_v50 = vld [vmem:[#allocation6 + $0x508] sm:$0xff]  ;;  %v253_v52 = vld [vmem:[#allocation6 + $0x518] sm:$0xff]  ;;  %v256_v61 = vld [vmem:[#allocation6 + $0x530] sm:$0xff] }
  0x6d   :  { %1008 = vmatpush1.bf16.msra.mxu0 %v1007_v33  ;;  %v234_v33 = vld [vmem:[#allocation6 + $0x480] sm:$0xff]  ;;  %v257_v53 = vld [vmem:[#allocation6 + $0x538] sm:$0xff]  ;;  %v259_v62 = vld [vmem:[#allocation6 + $0x548] sm:$0xff] }
  0x6e   :  { %1136 = vmatpush1.bf16.msra.mxu1 %v1135_v34  ;;  %1010 = vmatprep.subr.bf16.mxu0 %v1009_v35  ;;  %v238_v34 = vld [vmem:[#allocation6 + $0x4a0] sm:$0xff]  ;;  %v236_v35 = vld [vmem:[#allocation6 + $0x490] sm:$0xff]  ;;  %v1165_v60 = vpack.c.bf16 %v257_v53, %v253_v52  ;;  %v261_v0 = vld [vmem:[#allocation6 + $0x558] sm:$0xff] }
  0x6f   :  { %1138 = vmatprep.subr.bf16.mxu1 %v1137_v39  ;;  %v247_v39 = vld [vmem:[#allocation6 + $0x4e8] sm:$0xff]  ;;  %v1031_v42 = vpack.c.bf16 %v238_v34, %v234_v33  ;;  %v1159_v43 = vpack.c.bf16 %v240_v37, %v236_v35  ;;  %v265_v1 = vld [vmem:[#allocation6 + $0x578] sm:$0xff]  ;;  %v264_v9 = vld [vmem:[#allocation6 + $0x570] sm:$0xff] }
  0x70   :  { %v1033_v44 = vpack.c.bf16 %v247_v39, %v243_v38  ;;  %v1169_v8 = vpack.c.bf16 %v265_v1, %v261_v0  ;;  %v267_v10 = vld [vmem:[#allocation6 + $0x588] sm:$0xff]  ;;  %v269_v12 = vld [vmem:[#allocation6 + $0x598] sm:$0xff]  ;;  %v266_v16 = vld [vmem:[#allocation6 + $0x580] sm:$0xff] }
  0x71   :  { %1012 = vmatpush1.bf16.msra.mxu0 %v1011_v45  ;;  %v242_v45 = vld [vmem:[#allocation6 + $0x4c0] sm:$0xff]  ;;  %v273_v13 = vld [vmem:[#allocation6 + $0x5b8] sm:$0xff]  ;;  %v87_v14 = vld [vmem:[#allocation3 + $0x28] sm:$0xff] }
  0x72   :  { %1140 = vmatpush1.bf16.msra.mxu1 %v1139_v46  ;;  %1014 = vmatprep.subr.bf16.mxu0 %v1013_v47  ;;  %v246_v46 = vld [vmem:[#allocation6 + $0x4e0] sm:$0xff]  ;;  %v244_v47 = vld [vmem:[#allocation6 + $0x4d0] sm:$0xff]  ;;  %v1173_v23 = vpack.c.bf16 %v273_v13, %v269_v12  ;;  %v279_v25 = vld [vmem:[#allocation6 + $0x5e8] sm:$0xff] }
  0x73   :  { %1142 = vmatprep.subr.bf16.mxu1 %v1141_v51  ;;  %v255_v51 = vld [vmem:[#allocation6 + $0x528] sm:$0xff]  ;;  %v1035_v54 = vpack.c.bf16 %v246_v46, %v242_v45  ;;  %v1163_v55 = vpack.c.bf16 %v248_v49, %v244_v47  ;;  %v268_v21 = vld [vmem:[#allocation6 + $0x590] sm:$0xff]  ;;  %v85_v26 = vld [vmem:[#allocation3 + $0x18] sm:$0xff] }
  0x74   :  { %v1037_v56 = vpack.c.bf16 %v255_v51, %v251_v50  ;;  %v272_v22 = vld [vmem:[#allocation6 + $0x5b0] sm:$0xff]  ;;  %v277_v27 = vld [vmem:[#allocation6 + $0x5d8] sm:$0xff]  ;;  %v274_v33 = vld [vmem:[#allocation6 + $0x5c0] sm:$0xff] }
  0x75   :  { %1016 = vmatpush1.bf16.msra.mxu0 %v1015_v57  ;;  %v250_v57 = vld [vmem:[#allocation6 + $0x500] sm:$0xff]  ;;  %v281_v28 = vld [vmem:[#allocation6 + $0x5f8] sm:$0xff]  ;;  %v276_v35 = vld [vmem:[#allocation6 + $0x5d0] sm:$0xff] }
  0x76   :  { %1144 = vmatpush1.bf16.msra.mxu1 %v1143_v58  ;;  %1018 = vmatprep.subr.bf16.mxu0 %v1017_v59  ;;  %v254_v58 = vld [vmem:[#allocation6 + $0x520] sm:$0xff]  ;;  %v252_v59 = vld [vmem:[#allocation6 + $0x510] sm:$0xff]  ;;  %v283_v38 = vld [vmem:[#allocation6 + $0x608] sm:$0xff] }
  0x77   :  { %1146 = vmatprep.subr.bf16.mxu1 %v1145_v63  ;;  %v263_v63 = vld [vmem:[#allocation6 + $0x568] sm:$0xff]  ;;  %v1039_v2 = vpack.c.bf16 %v254_v58, %v250_v57  ;;  %v1167_v3 = vpack.c.bf16 %v256_v61, %v252_v59  ;;  %v278_v34 = vld [vmem:[#allocation6 + $0x5e0] sm:$0xff]  ;;  %v280_v37 = vld [vmem:[#allocation6 + $0x5f0] sm:$0xff] }
  0x78   :  { %v1041_v4 = vpack.c.bf16 %v263_v63, %v259_v62  ;;  %v287_v39 = vld [vmem:[#allocation6 + $0x628] sm:$0xff]  ;;  %v285_v40 = vld [vmem:[#allocation6 + $0x618] sm:$0xff]  ;;  %v282_v46 = vld [vmem:[#allocation6 + $0x600] sm:$0xff] }
  0x79   :  { %1020 = vmatpush1.bf16.msra.mxu0 %v1019_v5  ;;  %v258_v5 = vld [vmem:[#allocation6 + $0x540] sm:$0xff]  ;;  %v289_v41 = vld [vmem:[#allocation6 + $0x638] sm:$0xff]  ;;  %v1053_v45 = vpack.c.bf16 %v287_v39, %v283_v38  ;;  %v288_v50 = vld [vmem:[#allocation6 + $0x630] sm:$0xff] }
  0x7a   :  { %1148 = vmatpush1.bf16.msra.mxu1 %v1147_v6  ;;  %1022 = vmatprep.subr.bf16.mxu0 %v1021_v7  ;;  %v262_v6 = vld [vmem:[#allocation6 + $0x560] sm:$0xff]  ;;  %v260_v7 = vld [vmem:[#allocation6 + $0x550] sm:$0xff]  ;;  %v1181_v49 = vpack.c.bf16 %v289_v41, %v285_v40  ;;  %v291_v51 = vld [vmem:[#allocation6 + $0x648] sm:$0xff] }
  0x7b   :  { %1150 = vmatprep.subr.bf16.mxu1 %v1149_v11  ;;  %v271_v11 = vld [vmem:[#allocation6 + $0x5a8] sm:$0xff]  ;;  %v1043_v15 = vpack.c.bf16 %v262_v6, %v258_v5  ;;  %v286_v47 = vld [vmem:[#allocation6 + $0x620] sm:$0xff]  ;;  %v293_v53 = vld [vmem:[#allocation6 + $0x658] sm:$0xff] }
  0x7c   :  { %411 = vmatmul.mubr.f32.vlgmr.msra.gmra.mrb[0].mxu0 %v82_v17  ;;  %v295_v52 = vld [vmem:[#allocation6 + $0x668] sm:$0xff]  ;;  %v290_v58 = vld [vmem:[#allocation6 + $0x640] sm:$0xff]  ;;  %v296_v62 = vld [vmem:[#allocation6 + $0x670] sm:$0xff] }
  0x7d   :  { %1024 = vmatpush1.bf16.msra.mxu0 %v1023_v18  ;;  %565 = vmatmul.mubr.f32.vlgmr.msra.gmra.mrb[0].mxu1 %v82_v17  ;;  %v86_v17 = vld [vmem:[#allocation3 + $0x20] sm:$0xff]  ;;  %v1171_v18 = vpack.c.bf16 %v264_v9, %v260_v7  ;;  %v1057_v57 = vpack.c.bf16 %v295_v52, %v291_v51  ;;  %v299_v63 = vld [vmem:[#allocation6 + $0x688] sm:$0xff]  ;;  %v301_v1 = vld [vmem:[#allocation6 + $0x698] sm:$0xff] }
  0x7e   :  { %1152 = vmatpush1.bf16.msra.mxu1 %v1151_v19  ;;  %1026 = vmatprep.subr.bf16.mxu0 %v1025_v20  ;;  %v1045_v19 = vpack.c.bf16 %v271_v11, %v267_v10  ;;  %v270_v20 = vld [vmem:[#allocation6 + $0x5a0] sm:$0xff]  ;;  %v303_v0 = vld [vmem:[#allocation6 + $0x6a8] sm:$0xff]  ;;  %v300_v9 = vld [vmem:[#allocation6 + $0x690] sm:$0xff] }
  0x7f   :  { %1154 = vmatprep.subr.bf16.mxu1 %v1153_v24  ;;  %416 = vmatprep.mubr.f32.mxu0 %v87_v14  ;;  %v275_v24 = vld [vmem:[#allocation6 + $0x5c8] sm:$0xff]  ;;  %v1047_v29 = vpack.c.bf16 %v270_v20, %v266_v16  ;;  %v294_v59 = vld [vmem:[#allocation6 + $0x660] sm:$0xff]  ;;  %v1061_v6 = vpack.c.bf16 %v303_v0, %v299_v63  ;;  %v304_v11 = vld [vmem:[#allocation6 + $0x6b0] sm:$0xff] }
  0x80   :  { %570 = vmatprep.mubr.f32.mxu1 %v87_v14  ;;  %417 = vmatmul.mubr.f32.gmra.mrb[2].mxu0 %v86_v17  ;;  %v298_v7 = vld [vmem:[#allocation6 + $0x680] sm:$0xff]  ;;  %v307_v12 = vld [vmem:[#allocation6 + $0x6c8] sm:$0xff]  ;;  %v309_v14 = vld [vmem:[#allocation6 + $0x6d8] sm:$0xff] }
  0x81   :  { %1028 = vmatpush1.bf16.msra.mxu0 %v1027_v30  ;;  %571 = vmatmul.mubr.f32.gmra.mrb[2].mxu1 %v86_v17  ;;  %v673_v30 = vld [vmem:[#allocation8] sm:$0xff]  ;;  %v311_v13 = vld [vmem:[#allocation6 + $0x6e8] sm:$0xff]  ;;  %v1191_v17 = vpack.c.bf16 %v304_v11, %v300_v9  ;;  %v325_v38 = vld [vmem:[#allocation6 + $0x758] sm:$0xff] }
  0x82   :  { %1156 = vmatpush1.bf16.msra.mxu1 %v1155_v31  ;;  %1030 = vmatprep.subr.bf16.mxu0 %v1029_v32  ;;  %v1175_v31 = vpack.c.bf16 %v272_v22, %v268_v21  ;;  %v1049_v32 = vpack.c.bf16 %v279_v25, %v275_v24  ;;  %v310_v20 = vld [vmem:[#allocation6 + $0x6e0] sm:$0xff]  ;;  %v308_v21 = vld [vmem:[#allocation6 + $0x6d0] sm:$0xff]  ;;  %v315_v24 = vld [vmem:[#allocation6 + $0x708] sm:$0xff] }
  0x83   :  { %1158 = vmatprep.subr.bf16.mxu1 %v1157_v36  ;;  %487 = vmatprep.mubr.f32.mxu0 %v85_v26  ;;  %v1177_v36 = vpack.c.bf16 %v281_v28, %v277_v27  ;;  %v319_v25 = vld [vmem:[#allocation6 + $0x728] sm:$0xff]  ;;  %v321_v27 = vld [vmem:[#allocation6 + $0x738] sm:$0xff] }
  0x84   :  { %641 = vmatprep.mubr.f32.mxu1 %v85_v26  ;;  %685 = vperm.xlu0 %1233, %v673_v30   ;;  %v317_v26 = vld [vmem:[#allocation6 + $0x718] sm:$0xff] }
  0x85   :  { %1032 = vmatpush1.bf16.msra.mxu0 %v1031_v42  ;;  %828 = vperm.xlu1 %1234, %v673_v30   ;;  %v1051_v42 = vpack.c.bf16 %v278_v34, %v274_v33  ;;  %v316_v33 = vld [vmem:[#allocation6 + $0x710] sm:$0xff]  ;;  %v1197_v34 = vpack.c.bf16 %v321_v27, %v317_v26  ;;  %v329_v39 = vld [vmem:[#allocation6 + $0x778] sm:$0xff] }
  0x86   :  { %1160 = vmatpush1.bf16.msra.mxu1 %v1159_v43  ;;  %1034 = vmatprep.subr.bf16.mxu0 %v1033_v44  ;;  %v674_v43 = vld [vmem:[#allocation8 + $0x8] sm:$0xff]  ;;  %v1179_v44 = vpack.c.bf16 %v280_v37, %v276_v35  ;;  %v320_v35 = vld [vmem:[#allocation6 + $0x730] sm:$0xff]  ;;  %v337_v51 = vld [vmem:[#allocation6 + $0x7b8] sm:$0xff] }
  0x87   :  { %1162 = vmatprep.subr.bf16.mxu1 %v1161_v48  ;;  %v284_v48 = vld [vmem:[#allocation6 + $0x610] sm:$0xff]  ;;  %v327_v37 = vld [vmem:[#allocation6 + $0x768] sm:$0xff]  ;;  %v1199_v41 = vpack.c.bf16 %v320_v35, %v316_v33  ;;  %v345_v63 = vld [vmem:[#allocation6 + $0x7f8] sm:$0xff] }
  0x88   :  { %690 = vperm.xlu0 %1233, %v674_v43   ;;  %v89_v11 = vld [vmem:[#allocation3 + $0x38] sm:$0xff] }
  0x89   :  { %1036 = vmatpush1.bf16.msra.mxu0 %v1035_v54  ;;  %v297_v54 = vld [vmem:[#allocation6 + $0x678] sm:$0xff]  ;;  %832 = vperm.xlu1 %1234, %v674_v43  }
  0x8a   :  { %1164 = vmatpush1.bf16.msra.mxu1 %v1163_v55  ;;  %1038 = vmatprep.subr.bf16.mxu0 %v1037_v56  ;;  %v1055_v55 = vpack.c.bf16 %v286_v47, %v282_v46  ;;  %v1183_v56 = vpack.c.bf16 %v288_v50, %v284_v48  ;;  %v1185_v61 = vpack.c.bf16 %v297_v54, %v293_v53  ;;  %v328_v47 = vld [vmem:[#allocation6 + $0x770] sm:$0xff]  ;;  %v331_v48 = vld [vmem:[#allocation6 + $0x788] sm:$0xff]  ;;  %v333_v50 = vld [vmem:[#allocation6 + $0x798] sm:$0xff] }
  0x8b   :  { %1166 = vmatprep.subr.bf16.mxu1 %v1165_v60  ;;  %v292_v60 = vld [vmem:[#allocation6 + $0x650] sm:$0xff]  ;;  %v1201_v46 = vpack.c.bf16 %v329_v39, %v325_v38 }
  0x8c   :  { %v1187_v5 = vpack.c.bf16 %v296_v62, %v292_v60  ;;  %v339_v60 = vld [vmem:[#allocation6 + $0x7c8] sm:$0xff]  ;;  %v341_v62 = vld [vmem:[#allocation6 + $0x7d8] sm:$0xff] }
  0x8d   :  { %1040 = vmatpush1.bf16.msra.mxu0 %v1039_v2  ;;  %v305_v2 = vld [vmem:[#allocation6 + $0x6b8] sm:$0xff] }
  0x8e   :  { %1168 = vmatpush1.bf16.msra.mxu1 %v1167_v3  ;;  %1042 = vmatprep.subr.bf16.mxu0 %v1041_v4  ;;  %v1380_v3 = vmov 2   ;;  %v1059_v4 = vpack.c.bf16 %v294_v59, %v290_v58  ;;  %v1189_v10 = vpack.c.bf16 %v305_v2, %v301_v1  ;;  %v1205_v58 = vpack.c.bf16 %v337_v51, %v333_v50  ;;  %v336_v59 = vld [vmem:[#allocation6 + $0x7b0] sm:$0xff] }
  0x8f   :  { %1170 = vmatprep.subr.bf16.mxu1 %v1169_v8  ;;  %1235 = vset.pattern.permute.xlu0 %v1380_v3  ;;  %v302_v8 = vld [vmem:[#allocation6 + $0x6a0] sm:$0xff] }
  0x90   :  { %1236 = vset.pattern.permute.xlu1 %v1380_v3  ;;  %844 = vperm.xlu0 %1235, %v673_v30   ;;  %v1063_v16 = vpack.c.bf16 %v302_v8, %v298_v7  ;;  %v1069_v30 = vpack.c.bf16 %v319_v25, %v315_v24  ;;  %v338_v3 = vld [vmem:[#allocation6 + $0x7c0] sm:$0xff]  ;;  %v344_v7 = vld [vmem:[#allocation6 + $0x7f0] sm:$0xff] }
  0x91   :  { %1044 = vmatpush1.bf16.msra.mxu0 %v1043_v15  ;;  %848 = vperm.xlu1 %1236, %v674_v43   ;;  %v313_v15 = vld [vmem:[#allocation6 + $0x6f8] sm:$0xff]  ;;  %v322_v43 = vld [vmem:[#allocation6 + $0x740] sm:$0xff] }
  0x92   :  { %1172 = vmatpush1.bf16.msra.mxu1 %v1171_v18  ;;  %1046 = vmatprep.subr.bf16.mxu0 %v1045_v19  ;;  %v1065_v18 = vpack.c.bf16 %v311_v13, %v307_v12  ;;  %v306_v19 = vld [vmem:[#allocation6 + $0x6c0] sm:$0xff]  ;;  %v1193_v22 = vpack.c.bf16 %v313_v15, %v309_v14  ;;  %v88_v12 = vld [vmem:[#allocation3 + $0x30] sm:$0xff]  ;;  %v703_v13 = vlaneseq }
  0x93   :  { %1174 = vmatprep.subr.bf16.mxu1 %v1173_v23  ;;  %v312_v23 = vld [vmem:[#allocation6 + $0x6f0] sm:$0xff]  ;;  %v1067_v28 = vpack.c.bf16 %v310_v20, %v306_v19 }
  0x94   :  { %v704_v14 = vshrl.u32 %v703_v13, 7 }
  0x95   :  { %1048 = vmatpush1.bf16.msra.mxu0 %v1047_v29  ;;  %v1195_v29 = vpack.c.bf16 %v312_v23, %v308_v21 }
  0x96   :  { %1176 = vmatpush1.bf16.msra.mxu1 %v1175_v31  ;;  %1050 = vmatprep.subr.bf16.mxu0 %v1049_v32  ;;  %v314_v31 = vld [vmem:[#allocation6 + $0x700] sm:$0xff]  ;;  %v705_v15 = vsub.s32 0, %v704_v14  ;;  %v717_v19 = vsub.s32 3, %v704_v14 }
  0x97   :  { %1178 = vmatprep.subr.bf16.mxu1 %v1177_v36  ;;  %v318_v32 = vld [vmem:[#allocation6 + $0x720] sm:$0xff]  ;;  %v323_v36 = vld [vmem:[#allocation6 + $0x748] sm:$0xff] }
  0x98   :  { %v1071_v40 = vpack.c.bf16 %v318_v32, %v314_v31 }
  0x99   :  { %1052 = vmatpush1.bf16.msra.mxu0 %v1051_v42  ;;  %v1073_v42 = vpack.c.bf16 %v327_v37, %v323_v36 }
  0x9a   :  { %1180 = vmatpush1.bf16.msra.mxu1 %v1179_v44  ;;  %1054 = vmatprep.subr.bf16.mxu0 %v1053_v45  ;;  %v326_v44 = vld [vmem:[#allocation6 + $0x760] sm:$0xff]  ;;  %v324_v45 = vld [vmem:[#allocation6 + $0x750] sm:$0xff] }
  0x9b   :  { %1182 = vmatprep.subr.bf16.mxu1 %v1181_v49  ;;  %v335_v49 = vld [vmem:[#allocation6 + $0x7a8] sm:$0xff]  ;;  %v1075_v52 = vpack.c.bf16 %v326_v44, %v322_v43  ;;  %v1203_v53 = vpack.c.bf16 %v328_v47, %v324_v45 }
  0x9c   :  { %v1077_v54 = vpack.c.bf16 %v335_v49, %v331_v48 }
  0x9d   :  { %1056 = vmatpush1.bf16.msra.mxu0 %v1055_v55  ;;  %v330_v55 = vld [vmem:[#allocation6 + $0x780] sm:$0xff] }
  0x9e   :  { %1184 = vmatpush1.bf16.msra.mxu1 %v1183_v56  ;;  %1058 = vmatprep.subr.bf16.mxu0 %v1057_v57  ;;  %v334_v56 = vld [vmem:[#allocation6 + $0x7a0] sm:$0xff]  ;;  %v332_v57 = vld [vmem:[#allocation6 + $0x790] sm:$0xff] }
  0x9f   :  { %1186 = vmatprep.subr.bf16.mxu1 %v1185_v61  ;;  %v343_v61 = vld [vmem:[#allocation6 + $0x7e8] sm:$0xff]  ;;  %v1079_v0 = vpack.c.bf16 %v334_v56, %v330_v55  ;;  %v1207_v1 = vpack.c.bf16 %v336_v59, %v332_v57 }
  0xa0   :  { %v1081_v2 = vpack.c.bf16 %v343_v61, %v339_v60 }
  0xa1   :  { %1060 = vmatpush1.bf16.msra.mxu0 %v1059_v4  ;;  %v342_v4 = vld [vmem:[#allocation6 + $0x7e0] sm:$0xff] }
  0xa2   :  { %1188 = vmatpush1.bf16.msra.mxu1 %v1187_v5  ;;  %1062 = vmatprep.subr.bf16.mxu0 %v1061_v6  ;;  %v1209_v5 = vpack.c.bf16 %v345_v63, %v341_v62  ;;  %v340_v6 = vld [vmem:[#allocation6 + $0x7d0] sm:$0xff]  ;;  %v1083_v8 = vpack.c.bf16 %v342_v4, %v338_v3 }
  0xa3   :  { %1190 = vmatprep.subr.bf16.mxu1 %v1189_v10  ;;  %v1211_v9 = vpack.c.bf16 %v344_v7, %v340_v6  ;;  %v84_v10 = vld [vmem:[#allocation3 + $0x10] sm:$0xff] }
  0xa5   :  { %1064 = vmatpush1.bf16.msra.mxu0 %v1063_v16  ;;  %v701_v16 = vld [vmem:[%s1693_s3] sm:$0xf]  ;;  %s1381_s3 = smov [#allocation9]  }
  0xa6   :  { %1192 = vmatpush1.bf16.msra.mxu1 %v1191_v17  ;;  %1066 = vmatprep.subr.bf16.mxu0 %v1065_v18  ;;  %v713_v17 = vsub.s32 2, %v704_v14  ;;  %v709_v18 = vsub.s32 1, %v704_v14  ;;  %v706_v21 = vrot.slane %v701_v16, %v705_v15  ;;  %s920_s9 = sshll.u32 %s1381_s3, 4  ;;  %s921_s9 = int_to_ptr.vmem [resolvable:$true] %s920_s9 }
  0xa7   :  { %1194 = vmatprep.subr.bf16.mxu1 %v1193_v22  ;;  %s1319_s10 = scalar_lea.vmem %s921_s9, 1024  ;;  %p1324_p11 = scmp.lt.s32.totalorder %s921_s9, %s921_s9 }
  0xa8   :  { %v714_v23 = vrot.slane %v701_v16, %v713_v17  ;;  %v710_v24 = vrot.slane %v701_v16, %v709_v18  ;;  %p1320_p10 = scmp.ne.s32.totalorder %s921_s9, %s1319_s10  ;;  %p1325_p12 = scmp.lt.s32.totalorder %s1319_s10, %s1319_s10 }
  0xa9   :  { %1068 = vmatpush1.bf16.msra.mxu0 %v1067_v28  ;;  %v718_v28 = vrot.slane %v701_v16, %v717_v19 }
  0xaa   :  { %1196 = vmatpush1.bf16.msra.mxu1 %v1195_v29  ;;  %1070 = vmatprep.subr.bf16.mxu0 %v1069_v30  ;;  %p1326_p13 = por %p1325_p12, %p1324_p11 }
  0xab   :  { %1198 = vmatprep.subr.bf16.mxu1 %v1197_v34 }
  0xac   :  { %p1327_p0 = pnand %p1326_p13, %p1320_p10 }
  0xad   :  { %1072 = vmatpush1.bf16.msra.mxu0 %v1071_v40 }
  0xae   :  { %1200 = vmatpush1.bf16.msra.mxu1 %v1199_v41  ;;  %1074 = vmatprep.subr.bf16.mxu0 %v1073_v42 }
  0xaf   :  { %1202 = vmatprep.subr.bf16.mxu1 %v1201_v46 }
  0xb1   :  { %1076 = vmatpush1.bf16.msra.mxu0 %v1075_v52 }
  0xb2   :  { %1204 = vmatpush1.bf16.msra.mxu1 %v1203_v53  ;;  %1078 = vmatprep.subr.bf16.mxu0 %v1077_v54 }
  0xb3   :  { %1206 = vmatprep.subr.bf16.mxu1 %v1205_v58 }
  0xb5   :  { %1080 = vmatpush1.bf16.msra.mxu0 %v1079_v0 }
  0xb6   :  { %1208 = vmatpush1.bf16.msra.mxu1 %v1207_v1  ;;  %1082 = vmatprep.subr.bf16.mxu0 %v1081_v2 }
  0xb7   :  { %1210 = vmatprep.subr.bf16.mxu1 %v1209_v5 }
  0xb9   :  { %1084 = vmatpush1.bf16.msra.mxu0 %v1083_v8 }
  0xba   :  { %1212 = vmatpush1.bf16.msra.mxu1 %v1211_v9 }
  0xbc   :  { %488 = vmatmul.mubr.f32.vlgmr.msra.gmra.mrb[0].mxu0 %v84_v10 }
  0xbd   :  { %642 = vmatmul.mubr.f32.vlgmr.msra.gmra.mrb[0].mxu1 %v84_v10  ;;  %493 = vmatprep.mubr.f32.mxu0 %v89_v11 }
  0xbe   :  { %647 = vmatprep.mubr.f32.mxu1 %v89_v11 }
  0xc0   :  { %494 = vmatmul.mubr.f32.gmra.mrb[2].mxu0 %v88_v12 }
  0xc1   :  { %648 = vmatmul.mubr.f32.gmra.mrb[2].mxu1 %v88_v12 }
 0x103   :  { %v686_v20 = vpop.permute.xlu0 %685 }
 0x104   :  { %v829_v12 = vpop.permute.xlu1 %828 }
 0x107   :  { %v691_v35 = vpop.permute.xlu0 %690 }
 0x18f   :  { %v489_v22 = vpop.f32.mrb[0].mxu0 }
 0x190   :  { %v693_v25 = vmul.f32 %v686_v20, %v489_v22  ;;  %v643_v26 = vpop.f32.mrb[0].mxu1  ;;  %v491_v27 = vpop.f32.mrb[1].mxu0 }
 0x191   :  { %v695_v29 = vmul.f32 %v686_v20, %v643_v26  ;;  %v694_v30 = vmul.f32 %v686_v20, %v491_v27  ;;  %v645_v31 = vpop.f32.mrb[1].mxu1 }
 0x192   :  { %v723_v32 = vmul.f32 %v706_v21, %v693_v25  ;;  %v696_v33 = vmul.f32 %v686_v20, %v645_v31  ;;  %v1519_v25 = vpop.permute.xlu1 %832 }
 0x193   :  { %v725_v34 = vmul.f32 %v714_v23, %v695_v29  ;;  %v724_v36 = vmul.f32 %v710_v24, %v694_v30  ;;  %v495_v37 = vpop.f32.mrb[2].mxu0 }
 0x194   :  { %v1465_v38 = vclamps-f32 %v723_v32, 1.0  ;;  %v726_v39 = vmul.f32 %v718_v28, %v696_v33  ;;  %v697_v40 = vmul.f32 %v691_v35, %v495_v37  ;;  %v649_v41 = vpop.f32.mrb[2].mxu1  ;;  %v497_v42 = vpop.f32.mrb[3].mxu0 }
 0x195   :  { %v1467_v43 = vclamps-f32 %v725_v34, 1.0  ;;  %v1469_v44 = vclamps-f32 %v724_v36, 1.0  ;;  %v699_v45 = vmul.f32 %v691_v35, %v649_v41  ;;  %v698_v46 = vmul.f32 %v691_v35, %v497_v42  ;;  %v651_v47 = vpop.f32.mrb[3].mxu1 }
 0x196   :  { %v747_v48 = vmul.f32 %v1465_v38, %v1465_v38  ;;  %v883_v49 = vmul.f32 64.0, %v1465_v38  ;;  %v1474_v50 = vclamps-f32 %v726_v39, 1.0  ;;  %v727_v51 = vmul.f32 %v706_v21, %v697_v40 }
 0x197   :  { %v749_v52 = vmul.f32 %v1467_v43, %v1467_v43  ;;  %v885_v53 = vmul.f32 64.0, %v1467_v43  ;;  %v748_v54 = vmul.f32 %v1469_v44, %v1469_v44  ;;  %v884_v55 = vmul.f32 64.0, %v1469_v44 }
 0x198   :  { %v755_v56 = vsub.f32 1.0, %v747_v48  ;;  %891 = vst [vmem:[#allocation9] sm:$0xff] %v883_v49  ;;  %v750_v57 = vmul.f32 %v1474_v50, %v1474_v50  ;;  %v886_v58 = vmul.f32 64.0, %v1474_v50  ;;  %v1485_v59 = vclamps-f32 %v727_v51, 1.0 }
 0x199   :  { %893 = vst [vmem:[#allocation9 + $0x10] sm:$0xff] %v885_v53  ;;  %892 = vst [vmem:[#allocation9 + $0x8] sm:$0xff] %v884_v55  ;;  %v729_v60 = vmul.f32 %v714_v23, %v699_v45  ;;  %v728_v61 = vmul.f32 %v710_v24, %v698_v46  ;;  %v756_v63 = vsub.f32 1.0, %v748_v54  ;;  %v757_v4 = vsub.f32 1.0, %v749_v52 }
 0x19a   :  { %894 = vst [vmem:[#allocation9 + $0x18] sm:$0xff] %v886_v58  ;;  %v887_v62 = vmul.f32 64.0, %v1485_v59  ;;  %v751_v0 = vmul.f32 %v1485_v59, %v1485_v59  ;;  %v1494_v3 = vmax.f32 %v755_v56, 0.0  ;;  %v758_v5 = vsub.f32 1.0, %v750_v57 }
 0x19b   :  { %v1490_v1 = vclamps-f32 %v729_v60, 1.0  ;;  %v1492_v2 = vclamps-f32 %v728_v61, 1.0  ;;  %v700_v6 = vmul.f32 %v691_v35, %v651_v47  ;;  %v1502_v13 = vmax.f32 %v756_v63, 0.0 }
 0x19c   :  { %895 = vst [vmem:[#allocation9 + $0x20] sm:$0xff] %v887_v62  ;;  %v759_v14 = vsub.f32 1.0, %v751_v0  ;;  %v1504_v15 = vmax.f32 %v757_v4, 0.0  ;;  %1237 = vrsqrt.f32 %v1494_v3  ;;  %v1509_v18 = vmax.f32 %v758_v5, 0.0 }
 0x19d   :  { %v753_v7 = vmul.f32 %v1490_v1, %v1490_v1  ;;  %v889_v8 = vmul.f32 64.0, %v1490_v1  ;;  %v752_v9 = vmul.f32 %v1492_v2, %v1492_v2  ;;  %v888_v10 = vmul.f32 64.0, %v1492_v2 }
 0x19e   :  { %v730_v11 = vmul.f32 %v718_v28, %v700_v6  ;;  %v1514_v22 = vmax.f32 %v759_v14, 0.0  ;;  %1239 = vrsqrt.f32 %v1502_v13 }
 0x19f   :  { %897 = vst [vmem:[#allocation9 + $0x30] sm:$0xff] %v889_v8  ;;  %896 = vst [vmem:[#allocation9 + $0x28] sm:$0xff] %v888_v10  ;;  %v760_v16 = vsub.f32 1.0, %v752_v9  ;;  %v761_v19 = vsub.f32 1.0, %v753_v7  ;;  %1241 = vrsqrt.f32 %v1504_v15 }
 0x1a0   :  { %v1506_v17 = vclamps-f32 %v730_v11, 1.0  ;;  %1243 = vrsqrt.f32 %v1509_v18 }
 0x1a1   :  { %v1517_v23 = vmax.f32 %v760_v16, 0.0  ;;  %v1522_v26 = vmax.f32 %v761_v19, 0.0 }
 0x1a2   :  { %v754_v20 = vmul.f32 %v1506_v17, %v1506_v17  ;;  %v890_v21 = vmul.f32 64.0, %v1506_v17 }
 0x1a4   :  { %v762_v24 = vsub.f32 1.0, %v754_v20  ;;  %898 = vst [vmem:[#allocation9 + $0x38] sm:$0xff] %v890_v21 }
 0x1a5   :  { %1330 = shalt.err (!%p1327_p0)
}
 0x1a6   :  { %s1331_s13 = scalar_lea.hbm %s1694_s4, 1024 }
 0x1a7   :  { %p1332_p1 = scmp.ne.s32.totalorder %s1694_s4, %s1331_s13  ;;  %p1335_p2 = scmp.lt.u32.totalorder %s1331_s13, %s1694_s4 }
 0x1a9   :  { %p1337_p3 = pnand %p1335_p2, %p1332_p1 }
 0x1ab   :  { %1340 = shalt.err (!%p1337_p3)
}
 0x1ac   :  { %926 = dma.vmem_to_hbm [thread:$0]  %s921_s9, 1024, %s1694_s4, [#allocation5], %s1373_s30, %s1373_s30, %s1374_s6   ;;  %v1540_v27 = vmax.f32 %v762_v24, 0.0  ;;  %v1543_v28 = vmul.f32 %v1465_v38, %v829_v12  ;;  %v1546_v29 = vmul.f32 %v1469_v44, %v829_v12  ;;  %v1549_v30 = vmul.f32 %v1467_v43, %v829_v12  ;;  %v1238_v36 = vpop.eup %1237  ;;  %v845_v41 = vpop.permute.xlu0 %844 }
 0x1ad   :  { %v1552_v31 = vmul.f32 %v1474_v50, %v829_v12  ;;  %v1556_v32 = vmul.f32 %v1485_v59, %v1519_v25  ;;  %v1560_v33 = vmul.f32 %v1492_v2, %v1519_v25  ;;  %1245 = vrsqrt.f32 %v1514_v22  ;;  %v1240_v45 = vpop.eup %1239  ;;  %v849_v19 = vpop.permute.xlu1 %848  ;;  %s1382_s4 = smov [#allocation10]  }
 0x1ae   :  { %v1565_v34 = vmul.f32 %v1490_v1, %v1519_v25  ;;  %vm773_vm0 = vcmp.eq.f32.partialorder %v1494_v3, inf  ;;  %vm775_vm1 = vcmp.eq.f32.partialorder %v1494_v3, 0.0  ;;  %1247 = vrsqrt.f32 %v1517_v23  ;;  %v1242_v48 = vpop.eup %1241  ;;  %s932_s19 = sshll.u32 %s1382_s4, 4  ;;  %s933_s19 = int_to_ptr.vmem [resolvable:$true] %s932_s19 }
 0x1af   :  { %v776_v35 = vand.u32 2147483648, %v1494_v3  ;;  %vm780_vm2 = vcmp.eq.f32.partialorder %v1502_v13, inf  ;;  %vm782_vm3 = vcmp.eq.f32.partialorder %v1502_v13, 0.0  ;;  %1249 = vrsqrt.f32 %v1522_v26  ;;  %v1244_v53 = vpop.eup %1243  ;;  %s1341_s20 = scalar_lea.vmem %s933_s19, 1024  ;;  %p1346_p5 = scmp.lt.s32.totalorder %s933_s19, %s933_s19 }
 0x1b0   :  { %v783_v37 = vand.u32 2147483648, %v1502_v13  ;;  %vm787_vm4 = vcmp.eq.f32.partialorder %v1504_v15, inf  ;;  %vm789_vm5 = vcmp.eq.f32.partialorder %v1504_v15, 0.0  ;;  %1251 = vrsqrt.f32 %v1540_v27  ;;  %p1342_p4 = scmp.ne.s32.totalorder %s933_s19, %s1341_s20  ;;  %p1347_p6 = scmp.lt.s32.totalorder %s1341_s20, %s1341_s20 }
 0x1b1   :  { %v772_v39 = vmul.f32 %v1238_v36, %v1494_v3  ;;  %v790_v40 = vand.u32 2147483648, %v1504_v15  ;;  %vm794_vm6 = vcmp.eq.f32.partialorder %v1509_v18, inf  ;;  %vm796_vm7 = vcmp.eq.f32.partialorder %v1509_v18, 0.0 }
 0x1b2   :  { %v797_v42 = vand.u32 2147483648, %v1509_v18  ;;  %vm867_vm8 = vcmp.gt.f32.partialorder %v1465_v38, 0.0  ;;  %vm801_vm9 = vcmp.eq.f32.partialorder %v1514_v22, inf  ;;  %vm803_vm10 = vcmp.eq.f32.partialorder %v1514_v22, 0.0  ;;  %p1348_p7 = por %p1347_p6, %p1346_p5 }
 0x1b3   :  { %v774_v46 = vsel %vm773_vm0, %v1494_v3, %v772_v39  ;;  %vm868_vm11 = vcmp.gt.f32.partialorder %v1469_v44, 0.0  ;;  %v804_v47 = vand.u32 2147483648, %v1514_v22  ;;  %vm808_vm12 = vcmp.eq.f32.partialorder %v1517_v23, inf }
 0x1b4   :  { %v777_v49 = vsel %vm775_vm1, %v776_v35, %v774_v46  ;;  %v779_v51 = vmul.f32 %v1240_v45, %v1502_v13  ;;  %vm869_vm14 = vcmp.gt.f32.partialorder %v1467_v43, 0.0  ;;  %v811_v52 = vand.u32 2147483648, %v1517_v23  ;;  %p1349_p8 = pnand %p1348_p7, %p1342_p4 }
 0x1b5   :  { %v786_v54 = vmul.f32 %v1242_v48, %v1504_v15  ;;  %v851_v55 = vmul.f32 %v845_v41, %v777_v49  ;;  %vm870_vm0 = vcmp.gt.f32.partialorder %v1474_v50, 0.0  ;;  %vm817_vm13 = vcmp.eq.f32.partialorder %v1522_v26, 0.0 }
 0x1b6   :  { %v818_v56 = vand.u32 2147483648, %v1522_v26  ;;  %v781_v57 = vsel %vm780_vm2, %v1502_v13, %v779_v51  ;;  %v793_v58 = vmul.f32 %v1244_v53, %v1509_v18  ;;  %vm822_vm1 = vcmp.eq.f32.partialorder %v1540_v27, inf }
 0x1b7   :  { %vm824_vm15 = vcmp.eq.f32.partialorder %v1540_v27, 0.0  ;;  %v1246_v60 = vpop.eup %1245  ;;  %v784_v61 = vsel %vm782_vm3, %v783_v37, %v781_v57  ;;  %v788_v62 = vsel %vm787_vm4, %v1504_v15, %v786_v54  ;;  %v859_v63 = vsub.f32 %v1543_v28, %v851_v55 }
 0x1b8   :  { %v825_v0 = vand.u32 2147483648, %v1540_v27  ;;  %v1248_v3 = vpop.eup %1247  ;;  %v791_v4 = vsel %vm789_vm5, %v790_v40, %v788_v62  ;;  %v795_v5 = vsel %vm794_vm6, %v1509_v18, %v793_v58  ;;  %v852_v6 = vmul.f32 %v845_v41, %v784_v61 }
 0x1b9   :  { %v800_v7 = vmul.f32 %v1246_v60, %v1514_v22  ;;  %v1250_v8 = vpop.eup %1249  ;;  %v798_v9 = vsel %vm796_vm7, %v797_v42, %v795_v5  ;;  %v853_v10 = vmul.f32 %v845_v41, %v791_v4  ;;  %v875_v11 = vsel %vm867_vm8, %v859_v63, %v1465_v38 }
 0x1ba   :  { %v807_v12 = vmul.f32 %v1248_v3, %v1517_v23  ;;  %v1252_v13 = vpop.eup %1251  ;;  %v854_v14 = vmul.f32 %v845_v41, %v798_v9  ;;  %v860_v15 = vsub.f32 %v1546_v29, %v852_v6  ;;  %v899_v16 = vmul.f32 64.0, %v875_v11 }
 0x1bb   :  { %v802_v20 = vsel %vm801_vm9, %v1514_v22, %v800_v7  ;;  %v861_v18 = vsub.f32 %v1549_v30, %v853_v10  ;;  %v814_v24 = vmul.f32 %v1250_v8, %v1522_v26  ;;  %vm1696_vm2 = vcmp.eq.f32.partialorder %v1517_v23, 0.0 }
 0x1bc   :  { %v805_v21 = vsel %vm803_vm10, %v804_v47, %v802_v20  ;;  %v809_v38 = vsel %vm808_vm12, %v1517_v23, %v807_v12  ;;  %v862_v28 = vsub.f32 %v1552_v31, %v854_v14  ;;  %v876_v29 = vsel %vm868_vm11, %v860_v15, %v1469_v44  ;;  %907 = vst [vmem:[#allocation10] sm:$0xff] %v899_v16 }
 0x1bd   :  { %v812_v35 = vsel %vm1696_vm2, %v811_v52, %v809_v38  ;;  %v821_v30 = vmul.f32 %v1252_v13, %v1540_v27  ;;  %v877_v22 = vsel %vm869_vm14, %v861_v18, %v1467_v43  ;;  %v900_v36 = vmul.f32 64.0, %v876_v29 }
 0x1be   :  { %vm1697_vm3 = vcmp.eq.f32.partialorder %v1522_v26, inf  ;;  %v855_v31 = vmul.f32 %v849_v19, %v805_v21  ;;  %v878_v44 = vsel %vm870_vm0, %v862_v28, %v1474_v50  ;;  %v901_v39 = vmul.f32 64.0, %v877_v22 }
 0x1bf   :  { %v816_v37 = vsel %vm1697_vm3, %v1522_v26, %v814_v24  ;;  %v823_v40 = vsel %vm822_vm1, %v1540_v27, %v821_v30  ;;  %v902_v41 = vmul.f32 64.0, %v878_v44  ;;  %908 = vst [vmem:[#allocation10 + $0x8] sm:$0xff] %v900_v36  ;;  %v856_v42 = vmul.f32 %v849_v19, %v812_v35 }
 0x1c0   :  { %v819_v23 = vsel %vm817_vm13, %v818_v56, %v816_v37  ;;  %v826_v43 = vsel %vm824_vm15, %v825_v0, %v823_v40  ;;  %v842_v46 = vmul.f32 %v1506_v17, %v1519_v25  ;;  %909 = vst [vmem:[#allocation10 + $0x10] sm:$0xff] %v901_v39  ;;  %v863_v47 = vsub.f32 %v1556_v32, %v855_v31 }
 0x1c1   :  { %v857_v45 = vmul.f32 %v849_v19, %v819_v23  ;;  %v858_v50 = vmul.f32 %v849_v19, %v826_v43  ;;  %910 = vst [vmem:[#allocation10 + $0x18] sm:$0xff] %v902_v41  ;;  %v864_v26 = vsub.f32 %v1560_v33, %v856_v42  ;;  %vm871_vm4 = vcmp.gt.f32.partialorder %v1485_v59, 0.0 }
 0x1c2   :  { %vm872_vm5 = vcmp.gt.f32.partialorder %v1492_v2, 0.0  ;;  %vm873_vm6 = vcmp.gt.f32.partialorder %v1490_v1, 0.0  ;;  %v879_v27 = vsel %vm871_vm4, %v863_v47, %v1485_v59  ;;  %vm874_vm7 = vcmp.gt.f32.partialorder %v1506_v17, 0.0 }
 0x1c3   :  { %v865_v48 = vsub.f32 %v1565_v34, %v857_v45  ;;  %v866_v49 = vsub.f32 %v842_v46, %v858_v50  ;;  %v880_v25 = vsel %vm872_vm5, %v864_v26, %v1492_v2  ;;  %v903_v33 = vmul.f32 64.0, %v879_v27 }
 0x1c4   :  { %v904_v51 = vmul.f32 64.0, %v880_v25 }
 0x1c5   :  { %v881_v32 = vsel %vm873_vm6, %v865_v48, %v1490_v1  ;;  %v882_v34 = vsel %vm874_vm7, %v866_v49, %v1506_v17  ;;  %911 = vst [vmem:[#allocation10 + $0x20] sm:$0xff] %v903_v33 }
 0x1c6   :  { %v905_v52 = vmul.f32 64.0, %v881_v32  ;;  %v906_v53 = vmul.f32 64.0, %v882_v34  ;;  %912 = vst [vmem:[#allocation10 + $0x28] sm:$0xff] %v904_v51 }
 0x1c8   :  { %913 = vst [vmem:[#allocation10 + $0x30] sm:$0xff] %v905_v52  ;;  %914 = vst [vmem:[#allocation10 + $0x38] sm:$0xff] %v906_v53 }
 0x1c9   :  { %1352 = shalt.err (!%p1349_p8)
}
 0x1ca   :  { %s1353_s24 = scalar_lea.hbm %s1695_s5, 1024 }
 0x1cb   :  { %p1354_p9 = scmp.ne.s32.totalorder %s1695_s5, %s1353_s24  ;;  %p1357_p10 = scmp.lt.u32.totalorder %s1353_s24, %s1695_s5 }
 0x1cd   :  { %p1359_p11 = pnand %p1357_p10, %p1354_p9 }
 0x1cf   :  { %1362 = shalt.err (!%p1359_p11)
}
 0x1d0   :  { %938 = dma.vmem_to_hbm [thread:$0]  %s933_s19, 1024, %s1695_s5, [#allocation11], %s1373_s30, %s1373_s30, %s1374_s6  }
 0x1d1   :  { %1367 = dma.done.wait [#allocation5], 1024  }
 0x1d2   :  { %1368 = vsyncadd [#allocation5], 4294966272 }
 0x1d3   :  { %1369 = dma.done.wait [#allocation11], 1024  }
 0x1d4   :  { %1370 = vsyncadd [#allocation11], 4294966272 }
 0x1d5   :  { %945 = vsyncpa [#allocation4], 1 }
 0x1d6   :  { %946 = vsyncpa [#allocation7], 1 }
 0x1d7   :  { %947 = vsyncpa [#allocation5], 1 }
 0x1d8   :  { %948 = vsyncpa [#allocation11], 1 }

</bundles_post_ra>
